<compile_context>
chip_gen: v5e
topology: v5e:2x2
jax: 0.10.0
libtpu: 0.0.40
codegen_flags: <defaults>
</compile_context>

<pallas_src>
import functools

import jax
import jax.numpy as jnp
from jax.experimental import pallas as pl
from jax.experimental.pallas import tpu as pltpu

EPS = 1e-6  # matches partial(nn.LayerNorm, eps=1e-06)


def _layernorm(x, w, b):
    mu = jnp.mean(x, axis=-1, keepdims=True)
    var = jnp.mean((x - mu) ** 2, axis=-1, keepdims=True)  # biased, like PyTorch
    return (x - mu) * jax.lax.rsqrt(var + EPS) * w + b


def _gelu_exact(x):
    # torch.nn.GELU() default: 0.5 * x * (1 + erf(x / sqrt(2)))
    return 0.5 * x * (1.0 + jax.lax.erf(x * 0.7071067811865476))


# ----------------------------- fused encoder kernel ------------------------------ #

def encoder_kernel(num_heads, seq_len,
                   x_ref, pos_ref,
                   ln1_w_ref, ln1_b_ref, wqkv_ref, bqkv_ref, wo_ref, bo_ref,
                   ln2_w_ref, ln2_b_ref, w1_ref, b1_ref, w2_ref, b2_ref,
                   lnf_w_ref, lnf_b_ref,
                   out_ref,
                   x_vmem, ctx_vmem):
    layer = pl.program_id(1)
    last_layer = pl.num_programs(1) - 1
    bf16 = jnp.bfloat16

    @pl.when(layer == 0)
    def _():
        # input + pos_embedding; dropout -> identity in eval mode.
        # TODO(synk): training-mode dropout (random masking) not implemented.
        x_vmem[...] = x_ref[0] + pos_ref[0]

    x = x_vmem[...]                       # (S_pad, D) fp32 residual stream (VMEM resident)
    S_pad, D = x.shape
    dh = D // num_heads
    scale = 1.0 / float(dh) ** 0.5
    needs_mask = S_pad > seq_len          # static Python bool: emit mask code only if padded

    if needs_mask:
        # key-padding mask: padded key columns (>= seq_len) are excluded from softmax.
        key_valid = jax.lax.broadcasted_iota(jnp.int32, (1, S_pad), 1) < seq_len

    # ---------------- self-attention branch ----------------
    y = _layernorm(x, ln1_w_ref[0], ln1_b_ref[0])
    qkv = jnp.dot(y.astype(bf16), wqkv_ref[0],
                  preferred_element_type=jnp.float32) + bqkv_ref[0]
    q = qkv[:, 0:D]
    k = qkv[:, D:2 * D]
    v = qkv[:, 2 * D:3 * D]

    for h in range(num_heads):            # static head loop; heads written straight to scratch
        sl = slice(h * dh, (h + 1) * dh)
        qh = q[:, sl].astype(bf16)
        kh = k[:, sl].astype(bf16)
        vh = v[:, sl].astype(bf16)
        # bf16 QK^T with fp32 accumulation; scale applied on fp32 scores.
        s = jnp.einsum("qd,kd->qk", qh, kh,
                       preferred_element_type=jnp.float32) * scale
        if needs_mask:
            s = jnp.where(key_valid, s, jnp.float32(-1e30))
        s = s - jnp.max(s, axis=-1, keepdims=True)
        p = jnp.exp(s)
        p = p * pl.reciprocal(jnp.sum(p, axis=-1, keepdims=True), approx=True)
        ctx_vmem[:, sl] = jnp.dot(p.astype(bf16), vh,
                                  preferred_element_type=jnp.float32).astype(bf16)

    attn = jnp.dot(ctx_vmem[...], wo_ref[0],
                   preferred_element_type=jnp.float32) + bo_ref[0]
    x = x + attn                          # dropout -> identity (eval)

    # ---------------- MLP branch ----------------
    y = _layernorm(x, ln2_w_ref[0], ln2_b_ref[0])
    h1 = jnp.dot(y.astype(bf16), w1_ref[0],
                 preferred_element_type=jnp.float32) + b1_ref[0]
    h1 = _gelu_exact(h1)
    h2 = jnp.dot(h1.astype(bf16), w2_ref[0],
                 preferred_element_type=jnp.float32) + b2_ref[0]
    x = x + h2                            # dropout -> identity (eval)

    @pl.when(layer != last_layer)
    def _():
        x_vmem[...] = x                   # carry residual stream to next layer in VMEM

    @pl.when(layer == last_layer)
    def _():
        # fused final LayerNorm; output block hits HBM once per batch element.
        out_ref[0] = _layernorm(x, lnf_w_ref[...], lnf_b_ref[...])
    # TODO(synk): for large S (e.g. ViT-L, S=577) switch the attention section to an
    # online-softmax (flash) accumulation over K/V tiles to bound the (S,S) VMEM use.


# ------------------------------ host wrapper -------------------------------- #

def encoder_forward(x, params):
    B, S, D = x.shape
    H = params["num_heads"]
    L, _, threeD = params["wqkv"].shape
    M = params["w1"].shape[-1]
    assert D % H == 0 and threeD == 3 * D

    # pad sequence to a sublane multiple (8); padded keys are masked inside the kernel.
    S_pad = ((S + 7) // 8) * 8
    pos = params["pos_embedding"]
    if S_pad != S:
        x = jnp.pad(x, ((0, 0), (0, S_pad - S), (0, 0)))
        pos = jnp.pad(pos, ((0, 0), (0, S_pad - S), (0, 0)))

    bf16, f32 = jnp.bfloat16, jnp.float32

    xmap = lambda b, l: (b, 0, 0)          # per-batch activation block (same across layers)
    cmap3 = lambda b, l: (0, 0, 0)         # constant across the whole grid
    lmap3 = lambda b, l: (l, 0, 0)         # per-layer parameter block
    cmap2 = lambda b, l: (0, 0)

    in_specs = [
        pl.BlockSpec((1, S_pad, D), xmap),         # x
        pl.BlockSpec((1, S_pad, D), cmap3),        # pos_embedding
        pl.BlockSpec((1, 1, D), lmap3),            # ln1_w
        pl.BlockSpec((1, 1, D), lmap3),            # ln1_b
        pl.BlockSpec((1, D, 3 * D), lmap3),        # wqkv (bf16)
        pl.BlockSpec((1, 1, 3 * D), lmap3),        # bqkv
        pl.BlockSpec((1, D, D), lmap3),            # wo (bf16)
        pl.BlockSpec((1, 1, D), lmap3),            # bo
        pl.BlockSpec((1, 1, D), lmap3),            # ln2_w
        pl.BlockSpec((1, 1, D), lmap3),            # ln2_b
        pl.BlockSpec((1, D, M), lmap3),            # w1 (bf16)
        pl.BlockSpec((1, 1, M), lmap3),            # b1
        pl.BlockSpec((1, M, D), lmap3),            # w2 (bf16)
        pl.BlockSpec((1, 1, D), lmap3),            # b2
        pl.BlockSpec((1, D), cmap2),               # final LN weight
        pl.BlockSpec((1, D), cmap2),               # final LN bias
    ]

    out = pl.pallas_call(
        functools.partial(encoder_kernel, H, S),
        out_shape=jax.ShapeDtypeStruct((B, S_pad, D), f32),
        grid=(B, L),
        in_specs=in_specs,
        out_specs=pl.BlockSpec((1, S_pad, D), xmap),
        scratch_shapes=[
            pltpu.VMEM((S_pad, D), f32),    # residual stream, resident across layers
            pltpu.VMEM((S_pad, D), bf16),   # per-head context assembly (no concatenate)
        ],
        compiler_params=pltpu.CompilerParams(
            dimension_semantics=("parallel", "arbitrary"),  # B sharded across TCs, L sequential
            vmem_limit_bytes=48 * 1024 * 1024,              # explicit; fits v7x's 64 MiB VMEM
        ),
    )(
        x, pos,
        params["ln1_w"], params["ln1_b"],
        params["wqkv"].astype(bf16), params["bqkv"],
        params["wo"].astype(bf16), params["bo"],
        params["ln2_w"], params["ln2_b"],
        params["w1"].astype(bf16), params["b1"],
        params["w2"].astype(bf16), params["b2"],
        params["lnf_w"], params["lnf_b"],
    )
    return out[:, :S, :] if S_pad != S else out


def init_params(key, seq_length, num_layers, num_heads, hidden_dim, mlp_dim):
    D, M, L = hidden_dim, mlp_dim, num_layers
    ks = jax.random.split(key, 7)

    def nrm(k, shape):
        return 0.02 * jax.random.normal(k, shape, jnp.float32)

    # per-layer params stacked along a leading L axis; 1-D vectors stored as (L, 1, n)
    # so each layer's block is a clean full (1, n) last-two-dims tile.
    return {
        "num_heads": num_heads,
        "pos_embedding": nrm(ks[0], (1, seq_length, D)),
        "ln1_w": jnp.ones((L, 1, D), jnp.float32),
        "ln1_b": jnp.zeros((L, 1, D), jnp.float32),
        "wqkv": nrm(ks[1], (L, D, 3 * D)),   # = in_proj_weight.T per layer
        "bqkv": nrm(ks[2], (L, 1, 3 * D)),
        "wo": nrm(ks[3], (L, D, D)),         # = out_proj.weight.T per layer
        "bo": jnp.zeros((L, 1, D), jnp.float32),
        "ln2_w": jnp.ones((L, 1, D), jnp.float32),
        "ln2_b": jnp.zeros((L, 1, D), jnp.float32),
        "w1": nrm(ks[4], (L, D, M)),
        "b1": nrm(ks[5], (L, 1, M)),
        "w2": nrm(ks[6], (L, M, D)),
        "b2": jnp.zeros((L, 1, D), jnp.float32),
        "lnf_w": jnp.ones((1, D), jnp.float32),
        "lnf_b": jnp.zeros((1, D), jnp.float32),
    }


# --------------------------- pure-JAX fp32 reference --------------------------- #

def reference_forward(x, params):
    H = params["num_heads"]
    B, S, D = x.shape
    dh = D // H

    def ln(v, w, b):
        mu = v.mean(-1, keepdims=True)
        var = ((v - mu) ** 2).mean(-1, keepdims=True)
        return (v - mu) / jnp.sqrt(var + EPS) * w + b

    x = x + params["pos_embedding"]
    L = params["wqkv"].shape[0]
    for l in range(L):
        y = ln(x, params["ln1_w"][l, 0], params["ln1_b"][l, 0])
        qkv = y @ params["wqkv"][l] + params["bqkv"][l, 0]
        q, k, v = qkv[..., :D], qkv[..., D:2 * D], qkv[..., 2 * D:]
        q = q.reshape(B, S, H, dh).transpose(0, 2, 1, 3)
        k = k.reshape(B, S, H, dh).transpose(0, 2, 1, 3)
        v = v.reshape(B, S, H, dh).transpose(0, 2, 1, 3)
        s = (q @ jnp.swapaxes(k, -1, -2)) / jnp.sqrt(jnp.float32(dh))
        p = jax.nn.softmax(s, axis=-1)
        ctx = (p @ v).transpose(0, 2, 1, 3).reshape(B, S, D)
        x = x + ctx @ params["wo"][l] + params["bo"][l, 0]
        y = ln(x, params["ln2_w"][l, 0], params["ln2_b"][l, 0])
        h1 = jax.nn.gelu(y @ params["w1"][l] + params["b1"][l, 0], approximate=False)
        x = x + h1 @ params["w2"][l] + params["b2"][l, 0]
    return ln(x, params["lnf_w"][0], params["lnf_b"][0])


if __name__ == "__main__":
    # Small shapes consistent with the module's forward contract (B, S, D).
    B, S, D = 2, 8, 32
    num_layers, num_heads, mlp_dim = 2, 4, 64

    root = jax.random.PRNGKey(0)
    k_param, k_x = jax.random.split(root)
    params = init_params(k_param, S, num_layers, num_heads, D, mlp_dim)
    x = jax.random.normal(k_x, (B, S, D), jnp.float32)

    out = jax.block_until_ready(encoder_forward(x, params))
    assert out.shape == (B, S, D) and out.dtype == jnp.float32
    assert bool(jnp.all(jnp.isfinite(out)))

    ref = jax.block_until_ready(reference_forward(x, params))
    assert bool(jnp.allclose(out, ref, rtol=2e-2, atol=2e-2)), (
        float(jnp.max(jnp.abs(out - ref))))

    print("KERNEL_OK")
</pallas_src>

<mosaic_0001>
module attributes {stable_mosaic.version = 11 : i64} {
  func.func @encoder_kernel(%arg0: i32, %arg1: i32, %arg2: memref<1x8x32xf32, #tpu.memory_space<vmem>>, %arg3: memref<1x8x32xf32, #tpu.memory_space<vmem>>, %arg4: memref<1x1x32xf32, #tpu.memory_space<vmem>>, %arg5: memref<1x1x32xf32, #tpu.memory_space<vmem>>, %arg6: memref<1x32x96xbf16, #tpu.memory_space<vmem>>, %arg7: memref<1x1x96xf32, #tpu.memory_space<vmem>>, %arg8: memref<1x32x32xbf16, #tpu.memory_space<vmem>>, %arg9: memref<1x1x32xf32, #tpu.memory_space<vmem>>, %arg10: memref<1x1x32xf32, #tpu.memory_space<vmem>>, %arg11: memref<1x1x32xf32, #tpu.memory_space<vmem>>, %arg12: memref<1x32x64xbf16, #tpu.memory_space<vmem>>, %arg13: memref<1x1x64xf32, #tpu.memory_space<vmem>>, %arg14: memref<1x64x32xbf16, #tpu.memory_space<vmem>>, %arg15: memref<1x1x32xf32, #tpu.memory_space<vmem>>, %arg16: memref<1x32xf32, #tpu.memory_space<vmem>>, %arg17: memref<1x32xf32, #tpu.memory_space<vmem>>, %arg18: memref<1x8x32xf32, #tpu.memory_space<vmem>>, %arg19: memref<8x32xf32, #tpu.memory_space<vmem>>, %arg20: memref<8x32xbf16, #tpu.memory_space<vmem>>) attributes {dimension_semantics = [#tpu.dimension_semantics<parallel>, #tpu.dimension_semantics<arbitrary>], iteration_bounds = array<i64: 2, 2>, scalar_prefetch = 0 : i64, scratch_operands = 2 : i64, tpu.core_type = #tpu.core_type<tc>, window_params = [{transform_indices = @transform_0, window_bounds = array<i64: 1, 8, 32>}, {pipeline_mode = #tpu.pipeline_mode<synchronous>, transform_indices = @transform_1, window_bounds = array<i64: 1, 8, 32>}, {transform_indices = @transform_2, window_bounds = array<i64: 1, 1, 32>}, {transform_indices = @transform_3, window_bounds = array<i64: 1, 1, 32>}, {transform_indices = @transform_4, window_bounds = array<i64: 1, 32, 96>}, {transform_indices = @transform_5, window_bounds = array<i64: 1, 1, 96>}, {transform_indices = @transform_6, window_bounds = array<i64: 1, 32, 32>}, {transform_indices = @transform_7, window_bounds = array<i64: 1, 1, 32>}, {transform_indices = @transform_8, window_bounds = array<i64: 1, 1, 32>}, {transform_indices = @transform_9, window_bounds = array<i64: 1, 1, 32>}, {transform_indices = @transform_10, window_bounds = array<i64: 1, 32, 64>}, {transform_indices = @transform_11, window_bounds = array<i64: 1, 1, 64>}, {transform_indices = @transform_12, window_bounds = array<i64: 1, 64, 32>}, {transform_indices = @transform_13, window_bounds = array<i64: 1, 1, 32>}, {pipeline_mode = #tpu.pipeline_mode<synchronous>, transform_indices = @transform_14, window_bounds = array<i64: 1, 32>}, {pipeline_mode = #tpu.pipeline_mode<synchronous>, transform_indices = @transform_15, window_bounds = array<i64: 1, 32>}, {transform_indices = @transform_16, window_bounds = array<i64: 1, 8, 32>}]} {
    %c0_i32 = arith.constant 0 : i32
    %0 = arith.cmpi eq, %arg1, %c0_i32 : i32
    %1 = arith.extui %0 : i1 to i32
    %c0_i32_0 = arith.constant 0 : i32
    %2 = arith.cmpi ne, %1, %c0_i32_0 : i32
    scf.if %2 {
      %c0_84 = arith.constant 0 : index
      %c0_85 = arith.constant 0 : index
      %c0_86 = arith.constant 0 : index
      %199 = vector.load %arg2[%c0_84, %c0_85, %c0_86] : memref<1x8x32xf32, #tpu.memory_space<vmem>>, vector<1x8x32xf32>
      %200 = vector.shape_cast %199 : vector<1x8x32xf32> to vector<8x32xf32>
      %c0_87 = arith.constant 0 : index
      %c0_88 = arith.constant 0 : index
      %c0_89 = arith.constant 0 : index
      %201 = vector.load %arg3[%c0_87, %c0_88, %c0_89] : memref<1x8x32xf32, #tpu.memory_space<vmem>>, vector<1x8x32xf32>
      %202 = vector.shape_cast %201 : vector<1x8x32xf32> to vector<8x32xf32>
      %203 = arith.addf %200, %202 : vector<8x32xf32>
      %c0_90 = arith.constant 0 : index
      %c0_91 = arith.constant 0 : index
      %204 = vector.load %arg19[%c0_90, %c0_91] : memref<8x32xf32, #tpu.memory_space<vmem>>, vector<8x32xf32>
      tpu.vector_store %arg19[%c0_90, %c0_91], %203 {strides = array<i32>} : memref<8x32xf32, #tpu.memory_space<vmem>>, vector<8x32xf32>,
    } else {
    }
    %c0 = arith.constant 0 : index
    %c0_1 = arith.constant 0 : index
    %3 = vector.load %arg19[%c0, %c0_1] : memref<8x32xf32, #tpu.memory_space<vmem>>, vector<8x32xf32>
    %c0_2 = arith.constant 0 : index
    %c0_3 = arith.constant 0 : index
    %c0_4 = arith.constant 0 : index
    %4 = vector.load %arg4[%c0_2, %c0_3, %c0_4] : memref<1x1x32xf32, #tpu.memory_space<vmem>>, vector<1x1x32xf32>
    %5 = vector.shape_cast %4 : vector<1x1x32xf32> to vector<1x32xf32>
    %c0_5 = arith.constant 0 : index
    %c0_6 = arith.constant 0 : index
    %c0_7 = arith.constant 0 : index
    %6 = vector.load %arg5[%c0_5, %c0_6, %c0_7] : memref<1x1x32xf32, #tpu.memory_space<vmem>>, vector<1x1x32xf32>
    %7 = vector.shape_cast %6 : vector<1x1x32xf32> to vector<1x32xf32>
    %cst = arith.constant dense<0.000000e+00> : vector<8xf32>
    %8 = vector.multi_reduction <add>, %3, %cst [1] : vector<8x32xf32> to vector<8xf32>
    %9 = vector.shape_cast %8 : vector<8xf32> to vector<8x1xf32>
    %cst_8 = arith.constant 3.200000e+01 : f32
    %10 = vector.broadcast %cst_8 : f32 to vector<8x1xf32>
    %11 = arith.divf %9, %10 : vector<8x1xf32>
    %12 = vector.broadcast %11 : vector<8x1xf32> to vector<8x32xf32>
    %13 = arith.subf %3, %12 : vector<8x32xf32>
    %14 = arith.mulf %13, %13 : vector<8x32xf32>
    %cst_9 = arith.constant dense<0.000000e+00> : vector<8xf32>
    %15 = vector.multi_reduction <add>, %14, %cst_9 [1] : vector<8x32xf32> to vector<8xf32>
    %16 = vector.shape_cast %15 : vector<8xf32> to vector<8x1xf32>
    %cst_10 = arith.constant 3.200000e+01 : f32
    %17 = vector.broadcast %cst_10 : f32 to vector<8x1xf32>
    %18 = arith.divf %16, %17 : vector<8x1xf32>
    %19 = vector.broadcast %11 : vector<8x1xf32> to vector<8x32xf32>
    %20 = arith.subf %3, %19 : vector<8x32xf32>
    %cst_11 = arith.constant 9.99999997E-7 : f32
    %21 = vector.broadcast %cst_11 : f32 to vector<8x1xf32>
    %22 = arith.addf %18, %21 : vector<8x1xf32>
    %23 = math.rsqrt %22 : vector<8x1xf32>
    %24 = vector.broadcast %23 : vector<8x1xf32> to vector<8x32xf32>
    %25 = arith.mulf %20, %24 : vector<8x32xf32>
    %26 = vector.broadcast %5 : vector<1x32xf32> to vector<8x32xf32>
    %27 = arith.mulf %25, %26 : vector<8x32xf32>
    %28 = vector.broadcast %7 : vector<1x32xf32> to vector<8x32xf32>
    %29 = arith.addf %27, %28 : vector<8x32xf32>
    %30 = arith.truncf %29 : vector<8x32xf32> to vector<8x32xbf16>
    %c0_12 = arith.constant 0 : index
    %c0_13 = arith.constant 0 : index
    %c0_14 = arith.constant 0 : index
    %31 = vector.load %arg6[%c0_12, %c0_13, %c0_14] : memref<1x32x96xbf16, #tpu.memory_space<vmem>>, vector<1x32x96xbf16>
    %32 = vector.shape_cast %31 : vector<1x32x96xbf16> to vector<32x96xbf16>
    %cst_15 = arith.constant dense<0.000000e+00> : vector<8x96xf32>
    %33 = tpu.matmul %30, %32, %cst_15 {dimension_numbers = #tpu.dot_dimension_numbers<[1], [0], [0], [1], [0, 0, 1, 1], [], []>} : vector<8x32xbf16>, vector<32x96xbf16>, vector<8x96xf32> -> vector<8x96xf32>
    %c0_16 = arith.constant 0 : index
    %c0_17 = arith.constant 0 : index
    %c0_18 = arith.constant 0 : index
    %34 = vector.load %arg7[%c0_16, %c0_17, %c0_18] : memref<1x1x96xf32, #tpu.memory_space<vmem>>, vector<1x1x96xf32>
    %35 = vector.shape_cast %34 : vector<1x1x96xf32> to vector<1x96xf32>
    %36 = vector.broadcast %35 : vector<1x96xf32> to vector<8x96xf32>
    %37 = arith.addf %33, %36 : vector<8x96xf32>
    %38 = vector.extract_strided_slice %37 {offsets = [0, 0], sizes = [8, 32], strides = [1, 1]} : vector<8x96xf32> to vector<8x32xf32>
    %39 = vector.extract_strided_slice %37 {offsets = [0, 32], sizes = [8, 32], strides = [1, 1]} : vector<8x96xf32> to vector<8x32xf32>
    %40 = vector.extract_strided_slice %37 {offsets = [0, 64], sizes = [8, 32], strides = [1, 1]} : vector<8x96xf32> to vector<8x32xf32>
    %41 = vector.extract_strided_slice %38 {offsets = [0, 0], sizes = [8, 8], strides = [1, 1]} : vector<8x32xf32> to vector<8x8xf32>
    %42 = arith.truncf %41 : vector<8x8xf32> to vector<8x8xbf16>
    %43 = vector.extract_strided_slice %39 {offsets = [0, 0], sizes = [8, 8], strides = [1, 1]} : vector<8x32xf32> to vector<8x8xf32>
    %44 = arith.truncf %43 : vector<8x8xf32> to vector<8x8xbf16>
    %45 = vector.extract_strided_slice %40 {offsets = [0, 0], sizes = [8, 8], strides = [1, 1]} : vector<8x32xf32> to vector<8x8xf32>
    %46 = arith.truncf %45 : vector<8x8xf32> to vector<8x8xbf16>
    "tpu.trace_start"() <{level = 10 : i32, message = "qd,kd->qk"}> : () -> ()
    %cst_19 = arith.constant dense<0.000000e+00> : vector<8x8xf32>
    %47 = tpu.matmul %42, %44, %cst_19 {dimension_numbers = #tpu.dot_dimension_numbers<[1], [1], [0], [0], [0, 0, 1, 0], [], []>} : vector<8x8xbf16>, vector<8x8xbf16>, vector<8x8xf32> -> vector<8x8xf32>
    "tpu.trace_stop"() : () -> ()
    %cst_20 = arith.constant 0.353553385 : f32
    %48 = vector.broadcast %cst_20 : f32 to vector<8x8xf32>
    %49 = arith.mulf %47, %48 : vector<8x8xf32>
    %cst_21 = arith.constant dense<0xFF800000> : vector<8xf32>
    %50 = vector.multi_reduction <maximumf>, %49, %cst_21 [1] : vector<8x8xf32> to vector<8xf32>
    %51 = vector.shape_cast %50 : vector<8xf32> to vector<8x1xf32>
    %52 = vector.broadcast %51 : vector<8x1xf32> to vector<8x8xf32>
    %53 = arith.subf %49, %52 : vector<8x8xf32>
    %54 = math.exp %53 : vector<8x8xf32>
    %cst_22 = arith.constant dense<0.000000e+00> : vector<8xf32>
    %55 = vector.multi_reduction <add>, %54, %cst_22 [1] : vector<8x8xf32> to vector<8xf32>
    %56 = vector.shape_cast %55 : vector<8xf32> to vector<8x1xf32>
    %57 = tpu.reciprocal %56 {approx = true} : vector<8x1xf32> -> vector<8x1xf32>
    %58 = vector.broadcast %57 : vector<8x1xf32> to vector<8x8xf32>
    %59 = arith.mulf %54, %58 : vector<8x8xf32>
    %60 = arith.truncf %59 : vector<8x8xf32> to vector<8x8xbf16>
    %cst_23 = arith.constant dense<0.000000e+00> : vector<8x8xf32>
    %61 = tpu.matmul %60, %46, %cst_23 {dimension_numbers = #tpu.dot_dimension_numbers<[1], [0], [0], [1], [0, 0, 1, 1], [], []>} : vector<8x8xbf16>, vector<8x8xbf16>, vector<8x8xf32> -> vector<8x8xf32>
    %62 = arith.truncf %61 : vector<8x8xf32> to vector<8x8xbf16>
    %c0_24 = arith.constant 0 : index
    %c0_25 = arith.constant 0 : index
    %63 = vector.load %arg20[%c0_24, %c0_25] : memref<8x32xbf16, #tpu.memory_space<vmem>>, vector<8x8xbf16>
    tpu.vector_store %arg20[%c0_24, %c0_25], %62 {strides = array<i32>} : memref<8x32xbf16, #tpu.memory_space<vmem>>, vector<8x8xbf16>,
    %64 = vector.extract_strided_slice %38 {offsets = [0, 8], sizes = [8, 8], strides = [1, 1]} : vector<8x32xf32> to vector<8x8xf32>
    %65 = arith.truncf %64 : vector<8x8xf32> to vector<8x8xbf16>
    %66 = vector.extract_strided_slice %39 {offsets = [0, 8], sizes = [8, 8], strides = [1, 1]} : vector<8x32xf32> to vector<8x8xf32>
    %67 = arith.truncf %66 : vector<8x8xf32> to vector<8x8xbf16>
    %68 = vector.extract_strided_slice %40 {offsets = [0, 8], sizes = [8, 8], strides = [1, 1]} : vector<8x32xf32> to vector<8x8xf32>
    %69 = arith.truncf %68 : vector<8x8xf32> to vector<8x8xbf16>
    "tpu.trace_start"() <{level = 10 : i32, message = "qd,kd->qk"}> : () -> ()
    %cst_26 = arith.constant dense<0.000000e+00> : vector<8x8xf32>
    %70 = tpu.matmul %65, %67, %cst_26 {dimension_numbers = #tpu.dot_dimension_numbers<[1], [1], [0], [0], [0, 0, 1, 0], [], []>} : vector<8x8xbf16>, vector<8x8xbf16>, vector<8x8xf32> -> vector<8x8xf32>
    "tpu.trace_stop"() : () -> ()
    %cst_27 = arith.constant 0.353553385 : f32
    %71 = vector.broadcast %cst_27 : f32 to vector<8x8xf32>
    %72 = arith.mulf %70, %71 : vector<8x8xf32>
    %cst_28 = arith.constant dense<0xFF800000> : vector<8xf32>
    %73 = vector.multi_reduction <maximumf>, %72, %cst_28 [1] : vector<8x8xf32> to vector<8xf32>
    %74 = vector.shape_cast %73 : vector<8xf32> to vector<8x1xf32>
    %75 = vector.broadcast %74 : vector<8x1xf32> to vector<8x8xf32>
    %76 = arith.subf %72, %75 : vector<8x8xf32>
    %77 = math.exp %76 : vector<8x8xf32>
    %cst_29 = arith.constant dense<0.000000e+00> : vector<8xf32>
    %78 = vector.multi_reduction <add>, %77, %cst_29 [1] : vector<8x8xf32> to vector<8xf32>
    %79 = vector.shape_cast %78 : vector<8xf32> to vector<8x1xf32>
    %80 = tpu.reciprocal %79 {approx = true} : vector<8x1xf32> -> vector<8x1xf32>
    %81 = vector.broadcast %80 : vector<8x1xf32> to vector<8x8xf32>
    %82 = arith.mulf %77, %81 : vector<8x8xf32>
    %83 = arith.truncf %82 : vector<8x8xf32> to vector<8x8xbf16>
    %cst_30 = arith.constant dense<0.000000e+00> : vector<8x8xf32>
    %84 = tpu.matmul %83, %69, %cst_30 {dimension_numbers = #tpu.dot_dimension_numbers<[1], [0], [0], [1], [0, 0, 1, 1], [], []>} : vector<8x8xbf16>, vector<8x8xbf16>, vector<8x8xf32> -> vector<8x8xf32>
    %85 = arith.truncf %84 : vector<8x8xf32> to vector<8x8xbf16>
    %c0_31 = arith.constant 0 : index
    %c8 = arith.constant 8 : index
    %86 = vector.load %arg20[%c0_31, %c8] : memref<8x32xbf16, #tpu.memory_space<vmem>>, vector<8x8xbf16>
    tpu.vector_store %arg20[%c0_31, %c8], %85 {strides = array<i32>} : memref<8x32xbf16, #tpu.memory_space<vmem>>, vector<8x8xbf16>,
    %87 = vector.extract_strided_slice %38 {offsets = [0, 16], sizes = [8, 8], strides = [1, 1]} : vector<8x32xf32> to vector<8x8xf32>
    %88 = arith.truncf %87 : vector<8x8xf32> to vector<8x8xbf16>
    %89 = vector.extract_strided_slice %39 {offsets = [0, 16], sizes = [8, 8], strides = [1, 1]} : vector<8x32xf32> to vector<8x8xf32>
    %90 = arith.truncf %89 : vector<8x8xf32> to vector<8x8xbf16>
    %91 = vector.extract_strided_slice %40 {offsets = [0, 16], sizes = [8, 8], strides = [1, 1]} : vector<8x32xf32> to vector<8x8xf32>
    %92 = arith.truncf %91 : vector<8x8xf32> to vector<8x8xbf16>
    "tpu.trace_start"() <{level = 10 : i32, message = "qd,kd->qk"}> : () -> ()
    %cst_32 = arith.constant dense<0.000000e+00> : vector<8x8xf32>
    %93 = tpu.matmul %88, %90, %cst_32 {dimension_numbers = #tpu.dot_dimension_numbers<[1], [1], [0], [0], [0, 0, 1, 0], [], []>} : vector<8x8xbf16>, vector<8x8xbf16>, vector<8x8xf32> -> vector<8x8xf32>
    "tpu.trace_stop"() : () -> ()
    %cst_33 = arith.constant 0.353553385 : f32
    %94 = vector.broadcast %cst_33 : f32 to vector<8x8xf32>
    %95 = arith.mulf %93, %94 : vector<8x8xf32>
    %cst_34 = arith.constant dense<0xFF800000> : vector<8xf32>
    %96 = vector.multi_reduction <maximumf>, %95, %cst_34 [1] : vector<8x8xf32> to vector<8xf32>
    %97 = vector.shape_cast %96 : vector<8xf32> to vector<8x1xf32>
    %98 = vector.broadcast %97 : vector<8x1xf32> to vector<8x8xf32>
    %99 = arith.subf %95, %98 : vector<8x8xf32>
    %100 = math.exp %99 : vector<8x8xf32>
    %cst_35 = arith.constant dense<0.000000e+00> : vector<8xf32>
    %101 = vector.multi_reduction <add>, %100, %cst_35 [1] : vector<8x8xf32> to vector<8xf32>
    %102 = vector.shape_cast %101 : vector<8xf32> to vector<8x1xf32>
    %103 = tpu.reciprocal %102 {approx = true} : vector<8x1xf32> -> vector<8x1xf32>
    %104 = vector.broadcast %103 : vector<8x1xf32> to vector<8x8xf32>
    %105 = arith.mulf %100, %104 : vector<8x8xf32>
    %106 = arith.truncf %105 : vector<8x8xf32> to vector<8x8xbf16>
    %cst_36 = arith.constant dense<0.000000e+00> : vector<8x8xf32>
    %107 = tpu.matmul %106, %92, %cst_36 {dimension_numbers = #tpu.dot_dimension_numbers<[1], [0], [0], [1], [0, 0, 1, 1], [], []>} : vector<8x8xbf16>, vector<8x8xbf16>, vector<8x8xf32> -> vector<8x8xf32>
    %108 = arith.truncf %107 : vector<8x8xf32> to vector<8x8xbf16>
    %c0_37 = arith.constant 0 : index
    %c16 = arith.constant 16 : index
    %109 = vector.load %arg20[%c0_37, %c16] : memref<8x32xbf16, #tpu.memory_space<vmem>>, vector<8x8xbf16>
    tpu.vector_store %arg20[%c0_37, %c16], %108 {strides = array<i32>} : memref<8x32xbf16, #tpu.memory_space<vmem>>, vector<8x8xbf16>,
    %110 = vector.extract_strided_slice %38 {offsets = [0, 24], sizes = [8, 8], strides = [1, 1]} : vector<8x32xf32> to vector<8x8xf32>
    %111 = arith.truncf %110 : vector<8x8xf32> to vector<8x8xbf16>
    %112 = vector.extract_strided_slice %39 {offsets = [0, 24], sizes = [8, 8], strides = [1, 1]} : vector<8x32xf32> to vector<8x8xf32>
    %113 = arith.truncf %112 : vector<8x8xf32> to vector<8x8xbf16>
    %114 = vector.extract_strided_slice %40 {offsets = [0, 24], sizes = [8, 8], strides = [1, 1]} : vector<8x32xf32> to vector<8x8xf32>
    %115 = arith.truncf %114 : vector<8x8xf32> to vector<8x8xbf16>
    "tpu.trace_start"() <{level = 10 : i32, message = "qd,kd->qk"}> : () -> ()
    %cst_38 = arith.constant dense<0.000000e+00> : vector<8x8xf32>
    %116 = tpu.matmul %111, %113, %cst_38 {dimension_numbers = #tpu.dot_dimension_numbers<[1], [1], [0], [0], [0, 0, 1, 0], [], []>} : vector<8x8xbf16>, vector<8x8xbf16>, vector<8x8xf32> -> vector<8x8xf32>
    "tpu.trace_stop"() : () -> ()
    %cst_39 = arith.constant 0.353553385 : f32
    %117 = vector.broadcast %cst_39 : f32 to vector<8x8xf32>
    %118 = arith.mulf %116, %117 : vector<8x8xf32>
    %cst_40 = arith.constant dense<0xFF800000> : vector<8xf32>
    %119 = vector.multi_reduction <maximumf>, %118, %cst_40 [1] : vector<8x8xf32> to vector<8xf32>
    %120 = vector.shape_cast %119 : vector<8xf32> to vector<8x1xf32>
    %121 = vector.broadcast %120 : vector<8x1xf32> to vector<8x8xf32>
    %122 = arith.subf %118, %121 : vector<8x8xf32>
    %123 = math.exp %122 : vector<8x8xf32>
    %cst_41 = arith.constant dense<0.000000e+00> : vector<8xf32>
    %124 = vector.multi_reduction <add>, %123, %cst_41 [1] : vector<8x8xf32> to vector<8xf32>
    %125 = vector.shape_cast %124 : vector<8xf32> to vector<8x1xf32>
    %126 = tpu.reciprocal %125 {approx = true} : vector<8x1xf32> -> vector<8x1xf32>
    %127 = vector.broadcast %126 : vector<8x1xf32> to vector<8x8xf32>
    %128 = arith.mulf %123, %127 : vector<8x8xf32>
    %129 = arith.truncf %128 : vector<8x8xf32> to vector<8x8xbf16>
    %cst_42 = arith.constant dense<0.000000e+00> : vector<8x8xf32>
    %130 = tpu.matmul %129, %115, %cst_42 {dimension_numbers = #tpu.dot_dimension_numbers<[1], [0], [0], [1], [0, 0, 1, 1], [], []>} : vector<8x8xbf16>, vector<8x8xbf16>, vector<8x8xf32> -> vector<8x8xf32>
    %131 = arith.truncf %130 : vector<8x8xf32> to vector<8x8xbf16>
    %c0_43 = arith.constant 0 : index
    %c24 = arith.constant 24 : index
    %132 = vector.load %arg20[%c0_43, %c24] : memref<8x32xbf16, #tpu.memory_space<vmem>>, vector<8x8xbf16>
    tpu.vector_store %arg20[%c0_43, %c24], %131 {strides = array<i32>} : memref<8x32xbf16, #tpu.memory_space<vmem>>, vector<8x8xbf16>,
    %c0_44 = arith.constant 0 : index
    %c0_45 = arith.constant 0 : index
    %133 = vector.load %arg20[%c0_44, %c0_45] : memref<8x32xbf16, #tpu.memory_space<vmem>>, vector<8x32xbf16>
    %c0_46 = arith.constant 0 : index
    %c0_47 = arith.constant 0 : index
    %c0_48 = arith.constant 0 : index
    %134 = vector.load %arg8[%c0_46, %c0_47, %c0_48] : memref<1x32x32xbf16, #tpu.memory_space<vmem>>, vector<1x32x32xbf16>
    %135 = vector.shape_cast %134 : vector<1x32x32xbf16> to vector<32x32xbf16>
    %cst_49 = arith.constant dense<0.000000e+00> : vector<8x32xf32>
    %136 = tpu.matmul %133, %135, %cst_49 {dimension_numbers = #tpu.dot_dimension_numbers<[1], [0], [0], [1], [0, 0, 1, 1], [], []>} : vector<8x32xbf16>, vector<32x32xbf16>, vector<8x32xf32> -> vector<8x32xf32>
    %c0_50 = arith.constant 0 : index
    %c0_51 = arith.constant 0 : index
    %c0_52 = arith.constant 0 : index
    %137 = vector.load %arg9[%c0_50, %c0_51, %c0_52] : memref<1x1x32xf32, #tpu.memory_space<vmem>>, vector<1x1x32xf32>
    %138 = vector.shape_cast %137 : vector<1x1x32xf32> to vector<1x32xf32>
    %139 = vector.broadcast %138 : vector<1x32xf32> to vector<8x32xf32>
    %140 = arith.addf %136, %139 : vector<8x32xf32>
    %141 = arith.addf %3, %140 : vector<8x32xf32>
    %c0_53 = arith.constant 0 : index
    %c0_54 = arith.constant 0 : index
    %c0_55 = arith.constant 0 : index
    %142 = vector.load %arg10[%c0_53, %c0_54, %c0_55] : memref<1x1x32xf32, #tpu.memory_space<vmem>>, vector<1x1x32xf32>
    %143 = vector.shape_cast %142 : vector<1x1x32xf32> to vector<1x32xf32>
    %c0_56 = arith.constant 0 : index
    %c0_57 = arith.constant 0 : index
    %c0_58 = arith.constant 0 : index
    %144 = vector.load %arg11[%c0_56, %c0_57, %c0_58] : memref<1x1x32xf32, #tpu.memory_space<vmem>>, vector<1x1x32xf32>
    %145 = vector.shape_cast %144 : vector<1x1x32xf32> to vector<1x32xf32>
    %cst_59 = arith.constant dense<0.000000e+00> : vector<8xf32>
    %146 = vector.multi_reduction <add>, %141, %cst_59 [1] : vector<8x32xf32> to vector<8xf32>
    %147 = vector.shape_cast %146 : vector<8xf32> to vector<8x1xf32>
    %cst_60 = arith.constant 3.200000e+01 : f32
    %148 = vector.broadcast %cst_60 : f32 to vector<8x1xf32>
    %149 = arith.divf %147, %148 : vector<8x1xf32>
    %150 = vector.broadcast %149 : vector<8x1xf32> to vector<8x32xf32>
    %151 = arith.subf %141, %150 : vector<8x32xf32>
    %152 = arith.mulf %151, %151 : vector<8x32xf32>
    %cst_61 = arith.constant dense<0.000000e+00> : vector<8xf32>
    %153 = vector.multi_reduction <add>, %152, %cst_61 [1] : vector<8x32xf32> to vector<8xf32>
    %154 = vector.shape_cast %153 : vector<8xf32> to vector<8x1xf32>
    %cst_62 = arith.constant 3.200000e+01 : f32
    %155 = vector.broadcast %cst_62 : f32 to vector<8x1xf32>
    %156 = arith.divf %154, %155 : vector<8x1xf32>
    %157 = vector.broadcast %149 : vector<8x1xf32> to vector<8x32xf32>
    %158 = arith.subf %141, %157 : vector<8x32xf32>
    %cst_63 = arith.constant 9.99999997E-7 : f32
    %159 = vector.broadcast %cst_63 : f32 to vector<8x1xf32>
    %160 = arith.addf %156, %159 : vector<8x1xf32>
    %161 = math.rsqrt %160 : vector<8x1xf32>
    %162 = vector.broadcast %161 : vector<8x1xf32> to vector<8x32xf32>
    %163 = arith.mulf %158, %162 : vector<8x32xf32>
    %164 = vector.broadcast %143 : vector<1x32xf32> to vector<8x32xf32>
    %165 = arith.mulf %163, %164 : vector<8x32xf32>
    %166 = vector.broadcast %145 : vector<1x32xf32> to vector<8x32xf32>
    %167 = arith.addf %165, %166 : vector<8x32xf32>
    %168 = arith.truncf %167 : vector<8x32xf32> to vector<8x32xbf16>
    %c0_64 = arith.constant 0 : index
    %c0_65 = arith.constant 0 : index
    %c0_66 = arith.constant 0 : index
    %169 = vector.load %arg12[%c0_64, %c0_65, %c0_66] : memref<1x32x64xbf16, #tpu.memory_space<vmem>>, vector<1x32x64xbf16>
    %170 = vector.shape_cast %169 : vector<1x32x64xbf16> to vector<32x64xbf16>
    %cst_67 = arith.constant dense<0.000000e+00> : vector<8x64xf32>
    %171 = tpu.matmul %168, %170, %cst_67 {dimension_numbers = #tpu.dot_dimension_numbers<[1], [0], [0], [1], [0, 0, 1, 1], [], []>} : vector<8x32xbf16>, vector<32x64xbf16>, vector<8x64xf32> -> vector<8x64xf32>
    %c0_68 = arith.constant 0 : index
    %c0_69 = arith.constant 0 : index
    %c0_70 = arith.constant 0 : index
    %172 = vector.load %arg13[%c0_68, %c0_69, %c0_70] : memref<1x1x64xf32, #tpu.memory_space<vmem>>, vector<1x1x64xf32>
    %173 = vector.shape_cast %172 : vector<1x1x64xf32> to vector<1x64xf32>
    %174 = vector.broadcast %173 : vector<1x64xf32> to vector<8x64xf32>
    %175 = arith.addf %171, %174 : vector<8x64xf32>
    %cst_71 = arith.constant 5.000000e-01 : f32
    %176 = vector.broadcast %cst_71 : f32 to vector<8x64xf32>
    %177 = arith.mulf %176, %175 : vector<8x64xf32>
    %cst_72 = arith.constant 0.707106769 : f32
    %178 = vector.broadcast %cst_72 : f32 to vector<8x64xf32>
    %179 = arith.mulf %175, %178 : vector<8x64xf32>
    %180 = math.erf %179 : vector<8x64xf32>
    %cst_73 = arith.constant 1.000000e+00 : f32
    %181 = vector.broadcast %cst_73 : f32 to vector<8x64xf32>
    %182 = arith.addf %181, %180 : vector<8x64xf32>
    %183 = arith.mulf %177, %182 : vector<8x64xf32>
    %184 = arith.truncf %183 : vector<8x64xf32> to vector<8x64xbf16>
    %c0_74 = arith.constant 0 : index
    %c0_75 = arith.constant 0 : index
    %c0_76 = arith.constant 0 : index
    %185 = vector.load %arg14[%c0_74, %c0_75, %c0_76] : memref<1x64x32xbf16, #tpu.memory_space<vmem>>, vector<1x64x32xbf16>
    %186 = vector.shape_cast %185 : vector<1x64x32xbf16> to vector<64x32xbf16>
    %cst_77 = arith.constant dense<0.000000e+00> : vector<8x32xf32>
    %187 = tpu.matmul %184, %186, %cst_77 {dimension_numbers = #tpu.dot_dimension_numbers<[1], [0], [0], [1], [0, 0, 1, 1], [], []>} : vector<8x64xbf16>, vector<64x32xbf16>, vector<8x32xf32> -> vector<8x32xf32>
    %c0_78 = arith.constant 0 : index
    %c0_79 = arith.constant 0 : index
    %c0_80 = arith.constant 0 : index
    %188 = vector.load %arg15[%c0_78, %c0_79, %c0_80] : memref<1x1x32xf32, #tpu.memory_space<vmem>>, vector<1x1x32xf32>
    %189 = vector.shape_cast %188 : vector<1x1x32xf32> to vector<1x32xf32>
    %190 = vector.broadcast %189 : vector<1x32xf32> to vector<8x32xf32>
    %191 = arith.addf %187, %190 : vector<8x32xf32>
    %192 = arith.addf %141, %191 : vector<8x32xf32>
    %c1_i32 = arith.constant 1 : i32
    %193 = arith.cmpi ne, %arg1, %c1_i32 : i32
    %194 = arith.extui %193 : i1 to i32
    %c0_i32_81 = arith.constant 0 : i32
    %195 = arith.cmpi ne, %194, %c0_i32_81 : i32
    scf.if %195 {
      %c0_84 = arith.constant 0 : index
      %c0_85 = arith.constant 0 : index
      %199 = vector.load %arg19[%c0_84, %c0_85] : memref<8x32xf32, #tpu.memory_space<vmem>>, vector<8x32xf32>
      tpu.vector_store %arg19[%c0_84, %c0_85], %192 {strides = array<i32>} : memref<8x32xf32, #tpu.memory_space<vmem>>, vector<8x32xf32>,
    } else {
    }
    %c1_i32_82 = arith.constant 1 : i32
    %196 = arith.cmpi eq, %arg1, %c1_i32_82 : i32
    %197 = arith.extui %196 : i1 to i32
    %c0_i32_83 = arith.constant 0 : i32
    %198 = arith.cmpi ne, %197, %c0_i32_83 : i32
    scf.if %198 {
      %c0_84 = arith.constant 0 : index
      %c0_85 = arith.constant 0 : index
      %199 = vector.load %arg16[%c0_84, %c0_85] : memref<1x32xf32, #tpu.memory_space<vmem>>, vector<1x32xf32>
      %c0_86 = arith.constant 0 : index
      %c0_87 = arith.constant 0 : index
      %200 = vector.load %arg17[%c0_86, %c0_87] : memref<1x32xf32, #tpu.memory_space<vmem>>, vector<1x32xf32>
      %cst_88 = arith.constant dense<0.000000e+00> : vector<8xf32>
      %201 = vector.multi_reduction <add>, %192, %cst_88 [1] : vector<8x32xf32> to vector<8xf32>
      %202 = vector.shape_cast %201 : vector<8xf32> to vector<8x1xf32>
      %cst_89 = arith.constant 3.200000e+01 : f32
      %203 = vector.broadcast %cst_89 : f32 to vector<8x1xf32>
      %204 = arith.divf %202, %203 : vector<8x1xf32>
      %205 = vector.broadcast %204 : vector<8x1xf32> to vector<8x32xf32>
      %206 = arith.subf %192, %205 : vector<8x32xf32>
      %207 = arith.mulf %206, %206 : vector<8x32xf32>
      %cst_90 = arith.constant dense<0.000000e+00> : vector<8xf32>
      %208 = vector.multi_reduction <add>, %207, %cst_90 [1] : vector<8x32xf32> to vector<8xf32>
      %209 = vector.shape_cast %208 : vector<8xf32> to vector<8x1xf32>
      %cst_91 = arith.constant 3.200000e+01 : f32
      %210 = vector.broadcast %cst_91 : f32 to vector<8x1xf32>
      %211 = arith.divf %209, %210 : vector<8x1xf32>
      %212 = vector.broadcast %204 : vector<8x1xf32> to vector<8x32xf32>
      %213 = arith.subf %192, %212 : vector<8x32xf32>
      %cst_92 = arith.constant 9.99999997E-7 : f32
      %214 = vector.broadcast %cst_92 : f32 to vector<8x1xf32>
      %215 = arith.addf %211, %214 : vector<8x1xf32>
      %216 = math.rsqrt %215 : vector<8x1xf32>
      %217 = vector.broadcast %216 : vector<8x1xf32> to vector<8x32xf32>
      %218 = arith.mulf %213, %217 : vector<8x32xf32>
      %219 = vector.broadcast %199 : vector<1x32xf32> to vector<8x32xf32>
      %220 = arith.mulf %218, %219 : vector<8x32xf32>
      %221 = vector.broadcast %200 : vector<1x32xf32> to vector<8x32xf32>
      %222 = arith.addf %220, %221 : vector<8x32xf32>
      %c0_93 = arith.constant 0 : index
      %c0_94 = arith.constant 0 : index
      %c0_95 = arith.constant 0 : index
      %223 = vector.load %arg18[%c0_93, %c0_94, %c0_95] : memref<1x8x32xf32, #tpu.memory_space<vmem>>, vector<1x8x32xf32>
      %224 = vector.shape_cast %223 : vector<1x8x32xf32> to vector<8x32xf32>
      %225 = vector.shape_cast %222 : vector<8x32xf32> to vector<1x8x32xf32>
      tpu.vector_store %arg18[%c0_93, %c0_94, %c0_95], %225 {strides = array<i32>} : memref<1x8x32xf32, #tpu.memory_space<vmem>>, vector<1x8x32xf32>,
    } else {
    }
    return
  }
  func.func @transform_0(%arg0: i32, %arg1: i32) -> (i32, i32, i32) {
    %c0_i32 = arith.constant 0 : i32
    %c0_i32_0 = arith.constant 0 : i32
    %c0_i32_1 = arith.constant 0 : i32
    return %arg0, %c0_i32, %c0_i32_0 : i32, i32, i32
  }
  func.func @transform_1(%arg0: i32, %arg1: i32) -> (i32, i32, i32) {
    %c0_i32 = arith.constant 0 : i32
    %c0_i32_0 = arith.constant 0 : i32
    %c0_i32_1 = arith.constant 0 : i32
    %c0_i32_2 = arith.constant 0 : i32
    return %c0_i32, %c0_i32_0, %c0_i32_1 : i32, i32, i32
  }
  func.func @transform_2(%arg0: i32, %arg1: i32) -> (i32, i32, i32) {
    %c0_i32 = arith.constant 0 : i32
    %c0_i32_0 = arith.constant 0 : i32
    %c0_i32_1 = arith.constant 0 : i32
    return %arg1, %c0_i32, %c0_i32_0 : i32, i32, i32
  }
  func.func @transform_3(%arg0: i32, %arg1: i32) -> (i32, i32, i32) {
    %c0_i32 = arith.constant 0 : i32
    %c0_i32_0 = arith.constant 0 : i32
    %c0_i32_1 = arith.constant 0 : i32
    return %arg1, %c0_i32, %c0_i32_0 : i32, i32, i32
  }
  func.func @transform_4(%arg0: i32, %arg1: i32) -> (i32, i32, i32) {
    %c0_i32 = arith.constant 0 : i32
    %c0_i32_0 = arith.constant 0 : i32
    %c0_i32_1 = arith.constant 0 : i32
    return %arg1, %c0_i32, %c0_i32_0 : i32, i32, i32
  }
  func.func @transform_5(%arg0: i32, %arg1: i32) -> (i32, i32, i32) {
    %c0_i32 = arith.constant 0 : i32
    %c0_i32_0 = arith.constant 0 : i32
    %c0_i32_1 = arith.constant 0 : i32
    return %arg1, %c0_i32, %c0_i32_0 : i32, i32, i32
  }
  func.func @transform_6(%arg0: i32, %arg1: i32) -> (i32, i32, i32) {
    %c0_i32 = arith.constant 0 : i32
    %c0_i32_0 = arith.constant 0 : i32
    %c0_i32_1 = arith.constant 0 : i32
    return %arg1, %c0_i32, %c0_i32_0 : i32, i32, i32
  }
  func.func @transform_7(%arg0: i32, %arg1: i32) -> (i32, i32, i32) {
    %c0_i32 = arith.constant 0 : i32
    %c0_i32_0 = arith.constant 0 : i32
    %c0_i32_1 = arith.constant 0 : i32
    return %arg1, %c0_i32, %c0_i32_0 : i32, i32, i32
  }
  func.func @transform_8(%arg0: i32, %arg1: i32) -> (i32, i32, i32) {
    %c0_i32 = arith.constant 0 : i32
    %c0_i32_0 = arith.constant 0 : i32
    %c0_i32_1 = arith.constant 0 : i32
    return %arg1, %c0_i32, %c0_i32_0 : i32, i32, i32
  }
  func.func @transform_9(%arg0: i32, %arg1: i32) -> (i32, i32, i32) {
    %c0_i32 = arith.constant 0 : i32
    %c0_i32_0 = arith.constant 0 : i32
    %c0_i32_1 = arith.constant 0 : i32
    return %arg1, %c0_i32, %c0_i32_0 : i32, i32, i32
  }
  func.func @transform_10(%arg0: i32, %arg1: i32) -> (i32, i32, i32) {
    %c0_i32 = arith.constant 0 : i32
    %c0_i32_0 = arith.constant 0 : i32
    %c0_i32_1 = arith.constant 0 : i32
    return %arg1, %c0_i32, %c0_i32_0 : i32, i32, i32
  }
  func.func @transform_11(%arg0: i32, %arg1: i32) -> (i32, i32, i32) {
    %c0_i32 = arith.constant 0 : i32
    %c0_i32_0 = arith.constant 0 : i32
    %c0_i32_1 = arith.constant 0 : i32
    return %arg1, %c0_i32, %c0_i32_0 : i32, i32, i32
  }
  func.func @transform_12(%arg0: i32, %arg1: i32) -> (i32, i32, i32) {
    %c0_i32 = arith.constant 0 : i32
    %c0_i32_0 = arith.constant 0 : i32
    %c0_i32_1 = arith.constant 0 : i32
    return %arg1, %c0_i32, %c0_i32_0 : i32, i32, i32
  }
  func.func @transform_13(%arg0: i32, %arg1: i32) -> (i32, i32, i32) {
    %c0_i32 = arith.constant 0 : i32
    %c0_i32_0 = arith.constant 0 : i32
    %c0_i32_1 = arith.constant 0 : i32
    return %arg1, %c0_i32, %c0_i32_0 : i32, i32, i32
  }
  func.func @transform_14(%arg0: i32, %arg1: i32) -> (i32, i32) {
    %c0_i32 = arith.constant 0 : i32
    %c0_i32_0 = arith.constant 0 : i32
    %c0_i32_1 = arith.constant 0 : i32
    return %c0_i32, %c0_i32_0 : i32, i32
  }
  func.func @transform_15(%arg0: i32, %arg1: i32) -> (i32, i32) {
    %c0_i32 = arith.constant 0 : i32
    %c0_i32_0 = arith.constant 0 : i32
    %c0_i32_1 = arith.constant 0 : i32
    return %c0_i32, %c0_i32_0 : i32, i32
  }
  func.func @transform_16(%arg0: i32, %arg1: i32) -> (i32, i32, i32) {
    %c0_i32 = arith.constant 0 : i32
    %c0_i32_0 = arith.constant 0 : i32
    %c0_i32_1 = arith.constant 0 : i32
    return %arg0, %c0_i32, %c0_i32_0 : i32, i32, i32
  }
}

</mosaic_0001>

<bundles_post_ra>
// kernel: tpu_custom_call.1
= control target key start
LH: loop header
LB: loop body
LE: loop exit
PB: predicated region body
PF: predicated region fallthrough
CT: control target
= control target key end

     0   :  { %s2726_s0 = inlined_call_operand.hbm [shape: f32[2,8,32], index: 0, kind: input, shape index: {}]   ;;  %s2727_s1 = inlined_call_operand.hbm [shape: f32[1,8,32], index: 1, kind: input, shape index: {}]   ;;  %s2728_s2 = inlined_call_operand.hbm [shape: f32[2,1,32], index: 2, kind: input, shape index: {}]   ;;  %s2729_s3 = inlined_call_operand.hbm [shape: f32[2,1,32], index: 3, kind: input, shape index: {}]   ;;  %s2730_s4 = inlined_call_operand.vmem [shape: bf16[2,32,96], index: 4, kind: input, shape index: {}]   ;;  %s2731_s5 = inlined_call_operand.vmem [shape: f32[2,1,96], index: 5, kind: input, shape index: {}]   ;;  %s2732_s6 = inlined_call_operand.vmem [shape: bf16[2,32,32], index: 6, kind: input, shape index: {}]   ;;  %s2733_s7 = inlined_call_operand.vmem [shape: f32[2,1,32], index: 7, kind: input, shape index: {}]   ;;  %s2734_s8 = inlined_call_operand.vmem [shape: f32[2,1,32], index: 8, kind: input, shape index: {}]   ;;  %s2735_s9 = inlined_call_operand.hbm [shape: f32[2,1,32], index: 9, kind: input, shape index: {}]   ;;  %s2736_s10 = inlined_call_operand.vmem [shape: bf16[2,32,64], index: 10, kind: input, shape index: {}]   ;;  %s2737_s11 = inlined_call_operand.vmem [shape: f32[2,1,64], index: 11, kind: input, shape index: {}]   ;;  %s2738_s12 = inlined_call_operand.vmem [shape: bf16[2,64,32], index: 12, kind: input, shape index: {}]   ;;  %s2739_s13 = inlined_call_operand.vmem [shape: f32[2,1,32], index: 13, kind: input, shape index: {}]   ;;  %s2740_s14 = inlined_call_operand.vmem [shape: f32[1,32], index: 14, kind: input, shape index: {}]   ;;  %s2741_s15 = inlined_call_operand.vmem [shape: f32[1,32], index: 15, kind: input, shape index: {}]   ;;  %s2742_s16 = inlined_call_operand.hbm [shape: f32[2,8,32], index: 16, kind: output, shape index: {}]  }
   0x1   :  { %2758 = sst [smem:[#allocation31_spill]] %s2726_s0 }
   0x2   :  { %2759 = sst [smem:[#allocation32_spill]] %s2727_s1 }
   0x3   :  { %2760 = sst [smem:[#allocation33_spill]] %s2728_s2 }
   0x4   :  { %2761 = sst [smem:[#allocation34_spill]] %s2729_s3 }
   0x5   :  { %2762 = sst [smem:[#allocation35_spill]] %s2730_s4 }
   0x6   :  { %2763 = sst [smem:[#allocation36_spill]] %s2732_s6 }
   0x7   :  { %2764 = sst [smem:[#allocation37_spill]] %s2733_s7 }
   0x8   :  { %2765 = sst [smem:[#allocation38_spill]] %s2734_s8 }
   0x9   :  { %2766 = sst [smem:[#allocation39_spill]] %s2735_s9 }
   0xa   :  { %2767 = sst [smem:[#allocation40_spill]] %s2736_s10 }
   0xb   :  { %2768 = sst [smem:[#allocation41_spill]] %s2737_s11 }
   0xc   :  { %2769 = sst [smem:[#allocation42_spill]] %s2738_s12 }
   0xd   :  { %2770 = sst [smem:[#allocation43_spill]] %s2739_s13 }
   0xe   :  { %2771 = sst [smem:[#allocation44_spill]] %s2740_s14 }
   0xf   :  { %2772 = sst [smem:[#allocation45_spill]] %s2741_s15 }
  0x10   :  { %2773 = sst [smem:[#allocation46_spill]] %s2742_s16 }
  0x11   :  { %21 = vsyncpa [#allocation5], 0 }
  0x12   :  { %23 = vsyncpa [#allocation5 + $0x1], 0 }
  0x13   :  { %24 = vsyncpa [#allocation8], 0 }
  0x14   :  { %25 = vsyncpa [#allocation6], 0 }
  0x15   :  { %27 = vsyncpa [#allocation6 + $0x1], 0  ;;  %s2305_s21 = smov 0   ;;  %s2307_s22 = smov 0  }
  0x16   :  { %s2309_s23 = smov 0   ;;  %s2311_s24 = smov 0  }
  0x17   :  { %s2313_s25 = smov 0   ;;  %s2315_s26 = smov 0  }
  0x18   :  { %s2317_s27 = smov 0   ;;  %s2319_s28 = smov 0  }
  0x19   :  { %s2321_s29 = smov 0   ;;  %s2323_s30 = smov 0  }
  0x1a   :  { %s2325_s0 = smov 0  }
  0x1b LB: > { %2774 = sst [smem:[#allocation17_spill]] %s2166_s22  ;;  %s1651_s17 = sadd.s32 4294967294, %s2202_s0   ;;  %s2202_s0 = sphi %s2325_s0, %s33_s0   ;;  %s2198_s30 = sphi %s2323_s30, %s2833_s30   ;;  %s2194_s29 = sphi %s2321_s29, %s2832_s29   ;;  %s2190_s28 = sphi %s2319_s28, %s2831_s28   ;;  %s2186_s27 = sphi %s2317_s27, %s2836_s27   ;;  %s2182_s26 = sphi %s2315_s26, %s2829_s26   ;;  %s2178_s25 = sphi %s2313_s25, %s2835_s25   ;;  %s2174_s24 = sphi %s2311_s24, %s2834_s24   ;;  %s2170_s23 = sphi %s2309_s23, %s2827_s23   ;;  %s2166_s22 = sphi %s2307_s22, %s2826_s22   ;;  %s2162_s21 = sphi %s2305_s21, %s2825_s21  }
  0x1c   : > { %2775 = sst [smem:[#allocation18_spill]] %s2170_s23  ;;  %s42_s18 = sadd.s32 1, %s2194_s29 }
  0x1d   : > { %2776 = sst [smem:[#allocation19_spill]] %s2174_s24  ;;  %p43_p0 = scmp.ge.s32.totalorder %s42_s18, 2 }
  0x1e   : > { %2777 = sst [smem:[#allocation20_spill]] %s2182_s26  ;;  %s45_s19 = sadd.s32 1, %s2198_s30 }
  0x1f   : > { %2778 = sst [smem:[#allocation21_spill]] %s2190_s28  ;;  %s52_s20 = sadd.s32 1, %s2182_s26 }
  0x20   : > { %2779 = sst [smem:[#allocation22_spill]] %s2194_s29  ;;  %p59_p1 = scmp.ne.s32.totalorder %s2182_s26, %s2178_s25 }
  0x21   : > { %2780 = sst [smem:[#allocation23_spill]] %s2198_s30  ;;  %s2838_s18 = smov (%p43_p0, %s42_s18), 0 }
  0x22   : > { %2781 = sst [smem:[#allocation24_spill]] %s2202_s0  ;;  %s2840_s19 = smov (!%p43_p0, %s45_s19), %s2198_s30 }
  0x23   : > { %2782 = sst [smem:[#allocation25_spill]] %s2838_s18  ;;  %p60_p2 = scmp.eq.s32.totalorder %s2202_s0, 0 }
  0x24   : > { %p65_p3 = scmp.ne.s32.totalorder %s2178_s25, %s2174_s24  ;;  %p47_p4 = scmp.ge.s32.totalorder %s2840_s19, 2 }
  0x25   : > { %s96_s16 = ssub.s32 %s2194_s29, %s2838_s18  ;;  %p2377_p5 = por %p60_p2, %p59_p1 }
  0x26   : > { %p97_p6 = scmp.eq.s32.totalorder %s96_s16, 0  ;;  %s2842_s19 = smov (%p47_p4, %s2840_s19), 0 }
  0x27   : > { %2784 = sst [smem:[#allocation26_spill]] %s2842_s19  ;;  %s99_s15 = sadd.s32 1, %s2170_s23 }
  0x28   : > { %p106_p7 = scmp.ne.s32.totalorder %s2170_s23, %s2166_s22  ;;  %s49_s14 = ssub.s32 %s2198_s30, %s2842_s19 }
  0x29   : > { %p470_p8 = scmp.eq.s32.totalorder %s1651_s17, 3  ;;  %p50_p9 = scmp.eq.s32.totalorder %s49_s14, 0 }
  0x2a   : > { %p2388_p10 = por %p106_p7, %p60_p2  ;;  %p1779_p12 = scmp.lt.s32.totalorder %s2202_s0, 4 }
  0x2b   : > { %s2393_s18 = scalar_select %p97_p6, %s2170_s23, %s99_s15  }
  0x2c   : > { %s2396_s13 = scalar_select %p50_p9, %s2182_s26, %s52_s20  }
  0x2d   : > { %2786 = sst [smem:[#allocation27_spill]] %s2393_s18  ;;  %p2401_p11 = por %p470_p8, %p65_p3 }
  0x2e   : > { %2787 = sst [smem:[#allocation28_spill]] %s2396_s13  ;;  %s508_s17 = sand.u32 1, %s2202_s0  }
  0x2f   : > { %s2788_s16 = scalar_select %p2401_p11, 1, 0 }
  0x30   : > { %s510_s14 = sand.u32 1, %s2182_s26   ;;  %s1656_s11 = sshll.u32 %s2198_s30, 3 }
  0x31   : > { %2789 = sst [smem:[#allocation29_spill]] %s2788_s16  ;;  %s1655_s19 = sshll.u32 %s510_s14, 3 }
  0x32   : > { %s2790_s7 = sld [smem:[#allocation31_spill]]  ;;  %s512_s18 = scalar_lea.vmem [#allocation4], %s1655_s19 }
  0x33   : > { %s520_s20 = sshll.u32 %s512_s18, 4  ;;  %p1762_p13 = pnand %p1779_p12, %p2377_p5  ;;  %s521_s20 = int_to_ptr.vmem [resolvable:$true] %s520_s20 }
  0x34   : > { %p2416_p0 = pnand %p1779_p12, %p2388_p10  ;;  %s2421_s14 = sand.u32 1, %s2170_s23  }
  0x35   : > { %s2792_s2 = sld [smem:[#allocation33_spill]]  ;;  %s530_s10 = scalar_lea.vmem [#allocation9], %s2421_s14 }
  0x36   : > { %s2793_s3 = sld [smem:[#allocation34_spill]]  ;;  %s547_s18 = scalar_lea.vmem [#allocation10], %s2421_s14 }
  0x37   : > { %s554_s19 = sshll.u32 %s547_s18, 4  ;;  %p112_p4 = scmp.ne.s32.totalorder %s2166_s22, %s2162_s21  ;;  %s555_s19 = int_to_ptr.vmem [resolvable:$true] %s554_s19 }
  0x38   : > { %s516_s6 = scalar_lea.hbm %s2790_s7, %s1656_s11  ;;  %s2427_s7 = scalar_lea.sflag [#allocation5], %s508_s17 }
  0x39   : > { %s518_s15 = sshll.u32 %s516_s6, 4  ;;  %s537_s11 = sshll.u32 %s530_s10, 4  ;;  %s519_s15 = int_to_ptr.hbm [resolvable:$true] %s518_s15  ;;  %s538_s11 = int_to_ptr.vmem [resolvable:$true] %s537_s11 }
  0x3a   : > { %1764 = dma.hbm_to_vmem [thread:$0]  (!%p1762_p13), %s519_s15, 128, %s521_s20, %s2427_s7  }
  0x3b   : > { %s533_s6 = scalar_lea.hbm %s2792_s2, %s2194_s29  ;;  %s2443_s17 = sadd.s32 4294967295, %s2202_s0  }
  0x3c   : > { %s535_s8 = sshll.u32 %s533_s6, 4  ;;  %s550_s30 = scalar_lea.hbm %s2793_s3, %s2194_s29  ;;  %s536_s8 = int_to_ptr.hbm [resolvable:$true] %s535_s8 }
  0x3d   : > { %1767 = dma.hbm_to_vmem [thread:$0]  (!%p2416_p0), %s536_s8, 16, %s538_s11, %s2427_s7  }
  0x3e   : > { %s552_s16 = sshll.u32 %s550_s30, 4  ;;  %p66_p2 = scmp.eq.s32.totalorder %s2443_s17, 0  ;;  %s553_s16 = int_to_ptr.hbm [resolvable:$true] %s552_s16 }
  0x3f   : > { %1770 = dma.hbm_to_vmem [thread:$0]  (!%p2416_p0), %s553_s16, 16, %s555_s19, %s2427_s7  }
  0x40   : > { %p464_p5 = scmp.eq.s32.totalorder %s2443_s17, 3  ;;  %p1652_p6 = scmp.ge.s32.totalorder %s2202_s0, 1 }
  0x41   : > { %p2455_p7 = por %p66_p2, %p65_p3  ;;  %p2461_p8 = por %p112_p4, %p66_p2 }
  0x42   : > { %p2468_p9 = por %p464_p5, %p59_p1  ;;  %p477_p10 = scmp.lt.s32.totalorder %s2202_s0, 5 }
  0x43   : > { %s2798_s1 = sld [smem:[#allocation32_spill]]  ;;  %s2204_s12 = smov [#allocation7]  }
  0x44   : > { %s2796_s6 = scalar_select %p2468_p9, 1, 0 }
  0x45   : > { %p2476_p3 = pnand %p1652_p6, %p477_p10  ;;  %s491_s28 = sshll.u32 %s2204_s12, 4  ;;  %s492_s28 = int_to_ptr.vmem [resolvable:$true] %s491_s28 }
  0x46   : > { %2797 = sst [smem:[#allocation30_spill]] %s2796_s6  ;;  %s598_s21 = scalar_lea.vmem [#allocation11], %s2421_s14 }
  0x47   : > { %p1757_p12 = pneg %p2476_p3  ;;  %s2800_s9 = sld [smem:[#allocation39_spill]] }
  0x48   : > { %s605_s8 = sshll.u32 %s598_s21, 4  ;;  %s644_s12 = sand.u32 (!%p2476_p3), 1, %s2443_s17   ;;  %s606_s8 = int_to_ptr.vmem [resolvable:$true] %s605_s8 }
  0x49   : > { %s489_s10 = sshll.u32 %s2798_s1, 4  ;;  %p1758_p1 = pnand %p1757_p12, %p66_p2  ;;  %s490_s10 = int_to_ptr.hbm [resolvable:$true] %s489_s10 }
  0x4a   : > { %s2748_s30 = sand.u32 (!%p2476_p3), 1, %s2178_s25  }
  0x4b   : > { %1760 = dma.hbm_to_vmem [thread:$0]  (!%p1758_p1), %s490_s10, 128, %s492_s28, [#allocation8]  }
  0x4c   : > { %642 = sbr.rel (%p2476_p3) target bundleno = 2328 (0x918), region = 84  ;;  %s2498_s18 = sshll.u32 (!%p2476_p3), %s2748_s30, 3 }
  0x4d   : > { %s601_s19 = scalar_lea.hbm %s2800_s9, %s2194_s29  ;;  %s648_s14 = scalar_lea.vmem (!%p2476_p3), [#allocation4], %s2498_s18 }
  0x4e   : > { %s603_s16 = sshll.u32 %s601_s19, 4  ;;  %s645_s19 = scalar_lea.sflag (!%p2476_p3), [#allocation5], %s644_s12  ;;  %s604_s16 = int_to_ptr.hbm [resolvable:$true] %s603_s16 }
  0x4f   : > { %1773 = dma.hbm_to_vmem [thread:$0]  (!%p2416_p0), %s604_s16, 16, %s606_s8, %s2427_s7  }
  0x51   : > { %2145 = dma.done.wait (%p2455_p7), %s645_s19, 128  }
  0x52   : > { %2147 = vsyncadd (%p2455_p7), %s645_s19, 4294967168 }
  0x53   : > { %2149 = dma.done.wait (%p66_p2), [#allocation8], 128  }
  0x54   : > { %2151 = vsyncadd (%p66_p2), [#allocation8], 4294967168  ;;  %s2510_s13 = sand.u32 1, %s2166_s22  }
  0x55   : > { %2153 = dma.done.wait (%p2461_p8), %s645_s19, 48  }
  0x56   : > { %2155 = vsyncadd (%p2461_p8), %s645_s19, 4294967248  ;;  %p777_p13 = scmp.lt.s32.totalorder %s2186_s27, 1  ;;  %s2801_s4 = sld [smem:[#allocation35_spill]] }
  0x57   : > { %s2802_s19 = sld [smem:[#allocation36_spill]]  ;;  %s671_s9 = scalar_lea.vmem [#allocation10], %s2510_s13 }
  0x58   : > { %s2519_s15 = scalar_select %p777_p13, %s2186_s27, 1 }
  0x59   : > { %s2804_s26 = sld [smem:[#allocation38_spill]]  ;;  %s776_s29 = scalar_lea.vmem [#allocation12], %s2498_s18 }
  0x5a   : > { %s1729_s17 = sshll.u32 %s2519_s15, 4  ;;  %s2805_s20 = sld [smem:[#allocation40_spill]] }
  0x5b   : > { %s1732_s8 = sshll.u32 %s2519_s15, 5  ;;  %s2807_s0 = sld [smem:[#allocation43_spill]] }
  0x5c   : > { %s2529_s21 = scalar_lea.vmem %s2801_s4, %s1729_s17  ;;  %s2806_s4 = sld [smem:[#allocation41_spill]] }
  0x5d   : > { %s2534_s30 = scalar_lea.vmem %s2802_s19, %s1729_s17  ;;  %s2808_s7 = sld [smem:[#allocation42_spill]] }
  0x5e   : > { %p1669_p0 = scmp.ne.s32.totalorder %s2186_s27, 0 }
  0x5f   : > { %s795_s23 = scalar_lea.vmem %s2804_s26, %s2519_s15  ;;  %s680_s26 = scalar_lea.vmem [#allocation11], %s2510_s13 }
  0x60   : > { %s2547_s22 = scalar_lea.vmem %s2805_s20, %s1729_s17  ;;  %816 = sbr.rel (%p1669_p0) target bundleno = 105 (0x69), region = 108 }
  0x61   : > { %s811_s6 = scalar_lea.vmem %s2807_s0, %s2519_s15 }
  0x62   : > { %s803_s24 = scalar_lea.vmem %s2806_s4, %s2519_s15 }
  0x63   : > { %s2561_s3 = scalar_lea.vmem %s2808_s7, %s1732_s8 }
  0x65   : > { %v817_v0 = vld [vmem:[%s648_s14] sm:$0xff]  ;;  %v818_v1 = vld [vmem:[#allocation7] sm:$0xff]  ;;  %vm820_vm0 = vcmask 261120  }
  0x66   : > { %v819_v2 = vadd.f32 %v818_v1, %v817_v0 }
  0x68   : > { %821 = vst.msk [vmem:[#allocation2] sm:$0xff] %vm820_vm0, %v819_v2 }
  0x69 PF: > { %vm825_vm1 = vcmask 261120   ;;  %v2205_v5 = vmov 32.0   ;;  %v1734_v17 = vld [vmem:[%s2529_s21 + $0x8] sm:$0xff]  ;;  %v1733_v18 = vld [vmem:[%s2529_s21] sm:$0xff]  ;;  %s2809_s4 = scalar_lea.vmem [#allocation9], %s2510_s13  ;;  %s2810_s17 = scalar_lea.vmem %s2731_s5, %s2519_s15  ;;  %vm904_vm6 = vcmask 64512  }
  0x6a   : > { %1894 = vrcp.f32 %v2205_v5  ;;  %893 = vmatpush.bf16.msra.mxu0 %v1734_v17  ;;  %v1886_v28 = vld [vmem:[%s2809_s4] ss:$0 sm:$0xff]  ;;  %s2206_s20 = smov 104   ;;  %s2207_s21 = smov 120   ;;  %vm942_vm7 = vcmask 1043456   ;;  %vm960_vm8 = vcmask 60416  }
  0x6b   : > { %v1887_v31 = vld [vmem:[%s671_s9] ss:$0 sm:$0xff]  ;;  %s2208_s10 = smov 96   ;;  %s2209_s11 = smov 72   ;;  %vm1024_vm9 = vcmask 126016   ;;  %vm1088_vm10 = vcmask 191616  }
  0x6c   : > { %v1888_v35 = vld [vmem:[%s2810_s17] ss:$0 sm:$0xff]  ;;  %s2210_s28 = smov 88   ;;  %s2211_s16 = smov 112   ;;  %vm1152_vm11 = vcmask 257216  }
  0x6d   : > { %s2212_s8 = smov 80   ;;  %s2213_s12 = smov 64  }
  0x6e   : > { %894 = vmatpush.bf16.msra.mxu0 %v1733_v18  ;;  %s2214_s19 = smov 56   ;;  %s2215_s1 = smov 40  }
  0x6f   : > { %v2567_v3 = vld [vmem:[#allocation2] sm:$0xff]  ;;  %s2216_s2 = smov 48   ;;  %s2217_s7 = smov 8  }
  0x70   : > { %v826_v4 = vsel %vm825_vm1, %v2567_v3, 0.0  ;;  %v1895_v6 = vpop.eup %1894  ;;  %s2218_s9 = smov 24   ;;  %s2219_s4 = smov 16  }
  0x71   : > { %827 = vadd.xlane.f32.xlu0 %v826_v4  ;;  %v830_v7 = vmul.f32 32.0, %v1895_v6  ;;  %vm834_vm2 = vweird.f32 %v1895_v6  ;;  %s2811_s17 = sld [smem:[#allocation37_spill]]  ;;  %p1723_p2 = scmp.eq.s32.totalorder %s2186_s27, 1 }
  0x73   : > { %v831_v8 = vsub.f32 1.0, %v830_v7 }
  0x75   : > { %v832_v9 = vmul.f32 %v1895_v6, %v831_v8 }
  0x77   : > { %v833_v10 = vadd.f32 %v1895_v6, %v832_v9 }
  0x79   : > { %v2571_v11 = vsel %vm834_vm2, %v1895_v6, %v833_v10 }
  0xe4   : > { %v828_v12 = vpop.xlane.xlu0 %827 }
  0xe5   : > { %v836_v13 = vmul.f32 %v2571_v11, %v828_v12 }
  0xe7   : > { %v837_v14 = vsub.f32 %v2567_v3, %v836_v13 }
  0xe9   : > { %v838_v15 = vmul.f32 %v837_v14, %v837_v14 }
  0xeb   : > { %v839_v16 = vsel %vm825_vm1, %v838_v15, 0.0 }
  0xec   : > { %840 = vadd.xlane.f32.xlu0 %v839_v16 }
 0x15f   : > { %v841_v19 = vpop.xlane.xlu0 %840 }
 0x160   : > { %v842_v20 = vmul.f32 %v841_v19, %v2571_v11 }
 0x162   : > { %v843_v21 = vadd.f32 1e-06, %v842_v20 }
 0x164   : > { %1896 = vrsqrt.f32 %v843_v21  ;;  %vm850_vm4 = vweird.f32 %v843_v21 }
 0x16a   : > { %v1897_v22 = vpop.eup %1896 }
 0x16b   : > { %v845_v23 = vmul.f32 %v1897_v22, %v843_v21  ;;  %vm851_vm3 = vweird.f32 %v1897_v22 }
 0x16c   : > { %vm852_vm5 = vmor %vm850_vm4, %vm851_vm3  ;;  %vm1342_vm4 = vcmask 523264  }
 0x16d   : > { %v846_v24 = vmul.f32 %v1897_v22, %v845_v23 }
 0x16f   : > { %v847_v25 = vmul.f32 0.5, %v846_v24 }
 0x171   : > { %v848_v26 = vsub.f32 1.5, %v847_v25 }
 0x173   : > { %v849_v27 = vmul.f32 %v1897_v22, %v848_v26 }
 0x175   : > { %v853_v29 = vsel %vm852_vm5, %v1897_v22, %v849_v27 }
 0x176   : > { %v854_v30 = vmul.f32 %v853_v29, %v837_v14 }
 0x178   : > { %v858_v32 = vmul.f32 %v1886_v28, %v854_v30 }
 0x17a   : > { %v862_v33 = vadd.f32 %v1887_v31, %v858_v32 }
 0x17c   : > { %v863_v34 = vpack.c.bf16 %v862_v33, %v862_v33 }
 0x17e   : > { %1678 = vmatmul.msk.bf16.vlgmr.msra.gmra.mxu0 %vm825_vm1, %v863_v34 }
 0x1fb   : > { %v896_v36 = vpop.f32.mrf.mxu0 }
 0x1fc   : > { %v897_v37 = vadd.f32 %v1888_v35, %v896_v36 }
 0x1fe   : > { %v900_v38 = vpack.c.bf16 %v897_v37, %v897_v37 }
 0x200   : > { %1090 = vrot.lane.b32.xlu0 %v900_v38, %s2206_s20  ;;  %962 = vrot.lane.b32.xlu2 %v900_v38, %s2207_s21  ;;  %s2812_s20 = scalar_lea.vmem %s2811_s17, %s2519_s15 }
 0x201   : > { %902 = vrot.lane.b32.xlu1 %v900_v38, %s2208_s10 }
 0x203   : > { %v898_v39 = vpop.f32.mrf.mxu0 }
 0x208   : > { %1092 = vrot.lane.b32.xlu2 %v900_v38, %s2209_s11 }
 0x209   : > { %964 = vrot.lane.b32.xlu1 %v900_v38, %s2210_s28 }
 0x210   : > { %1026 = vrot.lane.b32.xlu2 %v900_v38, %s2211_s16 }
 0x211   : > { %1028 = vrot.lane.b32.xlu1 %v900_v38, %s2212_s8 }
 0x25a   : > { %v963_v40 = vpop.permute.xlu2 %962 }
 0x262   : > { %v1093_v43 = vpop.permute.xlu2 %1092 }
 0x263   : > { %v1098_v46 = vsel %vm904_vm6, %v1093_v43, 0 }
 0x26a   : > { %v1027_v49 = vpop.permute.xlu2 %1026 }
 0x272   : > { %v1091_v50 = vpop.permute.xlu0 %1090 }
 0x273   : > { %v903_v41 = vpop.permute.xlu1 %902 }
 0x274   : > { %v909_v42 = vsel %vm904_vm6, %v903_v41, 0 }
 0x275   : > { %918 = vmatpush.bf16.xpose.msra.mxu1 %v909_v42 }
 0x27b   : > { %v965_v44 = vpop.permute.xlu1 %964 }
 0x27c   : > { %1679 = vmatmul.msk.bf16.vlgmr.msra.gmra.mxu1 %vm904_vm6, %v900_v38  ;;  %v970_v45 = vsel %vm904_vm6, %v965_v44, 0 }
 0x27d   : > { %979 = vmatpush.bf16.xpose.msra.mxu3 %v970_v45 }
 0x283   : > { %v1029_v47 = vpop.permute.xlu1 %1028 }
 0x284   : > { %1681 = vmatmul.msk.bf16.vlgmr.msra.gmra.mxu3 %vm904_vm6, %v963_v40  ;;  %v1034_v48 = vsel %vm904_vm6, %v1029_v47, 0 }
 0x285   : > { %1107 = vmatpush.bf16.xpose.msrb.mxu3 %v1098_v46  ;;  %1043 = vmatpush.bf16.xpose.msrb.mxu0 %v1034_v48 }
 0x28c   : > { %1683 = vmatmul.msk.bf16.vlgmr.msrb.gmra.mxu0 %vm904_vm6, %v1027_v49 }
 0x294   : > { %1685 = vmatmul.msk.bf16.vlgmr.msrb.gmra.mxu3 %vm904_vm6, %v1091_v50 }
 0x2f9   : > { %v920_v51 = vpop.f32.mrf.mxu1 }
 0x2fa   : > { %v924_v52 = vmul.f32 0.35355338, %v920_v51 }
 0x2fc   : > { %v925_v53 = vsel %vm904_vm6, %v924_v52, -inf }
 0x2fd   : > { %926 = vmax.xlane.f32.xlu1 %v925_v53 }
 0x301   : > { %v922_v54 = vpop.f32.mrf.mxu1 }
 0x307   : > { %v981_v55 = vpop.f32.mrf.mxu3 }
 0x308   : > { %v985_v56 = vmul.f32 0.35355338, %v981_v55 }
 0x309   : > { %v1045_v57 = vpop.f32.mrf.mxu0 }
 0x30a   : > { %v986_v58 = vsel %vm904_vm6, %v985_v56, -inf  ;;  %v1049_v59 = vmul.f32 0.35355338, %v1045_v57 }
 0x30b   : > { %987 = vmax.xlane.f32.xlu2 %v986_v58 }
 0x30c   : > { %v1050_v62 = vsel %vm904_vm6, %v1049_v59, -inf }
 0x30f   : > { %v983_v60 = vpop.f32.mrf.mxu3 }
 0x311   : > { %v1047_v61 = vpop.f32.mrf.mxu0 }
 0x312   : > { %v1736_v61 = vld [vmem:[%s2534_s30 + $0x8] sm:$0xff] }
 0x313   : > { %1051 = vmax.xlane.f32.xlu2 %v1050_v62  ;;  %1184 = vmatpush.bf16.msra.mxu0 %v1736_v61  ;;  %v1735_v62 = vld [vmem:[%s2534_s30] sm:$0xff] }
 0x317   : > { %v1109_v63 = vpop.f32.mrf.mxu3  ;;  %1185 = vmatpush.bf16.msra.mxu0 %v1735_v62 }
 0x318   : > { %v1113_v0 = vmul.f32 0.35355338, %v1109_v63 }
 0x31a   : > { %v1114_v1 = vsel %vm904_vm6, %v1113_v0, -inf }
 0x31b   : > { %1115 = vmax.xlane.f32.xlu0 %v1114_v1 }
 0x31f   : > { %v1111_v2 = vpop.f32.mrf.mxu3 }
 0x32b   : > { %937 = vrot.lane.b32.xlu2 %v900_v38, %s2213_s12 }
 0x32f   : > { %998 = vrot.lane.b32.xlu0 %v900_v38, %s2214_s19 }
 0x333   : > { %1126 = vrot.lane.b32.xlu2 %v900_v38, %s2215_s1 }
 0x337   : > { %1062 = vrot.lane.b32.xlu0 %v900_v38, %s2216_s2 }
 0x370   : > { %v927_v4 = vpop.xlane.xlu1 %926 }
 0x371   : > { %v928_v5 = vsub.f32 %v924_v52, %v927_v4  ;;  %v1889_v4 = vld [vmem:[%s2812_s20] ss:$0 sm:$0xff] }
 0x373   : > { %v929_v6 = vmul.f32 1.442695, %v928_v5 }
 0x375   : > { %1898 = vpow2.f32 %v929_v6 }
 0x37b   : > { %v1899_v7 = vpop.eup %1898 }
 0x37c   : > { %v931_v8 = vsel %vm904_vm6, %v1899_v7, 0.0 }
 0x37d   : > { %932 = vadd.xlane.f32.xlu1 %v931_v8 }
 0x37e   : > { %v988_v9 = vpop.xlane.xlu2 %987 }
 0x37f   : > { %v989_v10 = vsub.f32 %v985_v56, %v988_v9 }
 0x381   : > { %v990_v12 = vmul.f32 1.442695, %v989_v10 }
 0x383   : > { %1900 = vpow2.f32 %v990_v12 }
 0x386   : > { %v1052_v13 = vpop.xlane.xlu2 %1051 }
 0x387   : > { %v1053_v20 = vsub.f32 %v1049_v59, %v1052_v13 }
 0x389   : > { %v1901_v14 = vpop.eup %1900  ;;  %v1054_v22 = vmul.f32 1.442695, %v1053_v20 }
 0x38a   : > { %v992_v15 = vsel %vm904_vm6, %v1901_v14, 0.0 }
 0x38b   : > { %993 = vadd.xlane.f32.xlu1 %v992_v15 }
 0x38e   : > { %v1116_v16 = vpop.xlane.xlu0 %1115  ;;  %v938_v17 = vpop.permute.xlu2 %937 }
 0x38f   : > { %v1117_v18 = vsub.f32 %v1113_v0, %v1116_v16  ;;  %v944_v19 = vsel %vm942_vm7, %v938_v17, 0  ;;  %v1738_v16 = vld [vmem:[%s2547_s22 + $0x8] sm:$0xff]  ;;  %v1737_v17 = vld [vmem:[%s2547_s22] sm:$0xff] }
 0x390   : > { %953 = vmatpush.bf16.msra.mxu2 %v944_v19 }
 0x391   : > { %v1118_v21 = vmul.f32 1.442695, %v1117_v18 }
 0x393   : > { %1902 = vpow2.f32 %v1118_v21 }
 0x394   : > { %1904 = vpow2.f32 %v1054_v22 }
 0x396   : > { %v1127_v34 = vpop.permute.xlu2 %1126 }
 0x397   : > { %v1132_v36 = vsel %vm942_vm7, %v1127_v34, 0 }
 0x399   : > { %v1903_v23 = vpop.eup %1902 }
 0x39a   : > { %v1120_v24 = vsel %vm904_vm6, %v1903_v23, 0.0  ;;  %v1905_v25 = vpop.eup %1904 }
 0x39b   : > { %1121 = vadd.xlane.f32.xlu1 %v1120_v24  ;;  %v1056_v28 = vsel %vm904_vm6, %v1905_v25, 0.0 }
 0x3a1   : > { %v999_v26 = vpop.permute.xlu0 %998 }
 0x3a2   : > { %v1004_v27 = vsel %vm942_vm7, %v999_v26, 0  ;;  %v1890_v26 = vld [vmem:[%s795_s23] ss:$0 sm:$0xff] }
 0x3a3   : > { %1013 = vmatpush.bf16.msrb.mxu2 %v1004_v27  ;;  %1057 = vadd.xlane.f32.xlu1 %v1056_v28 }
 0x3a9   : > { %v1063_v29 = vpop.permute.xlu0 %1062 }
 0x3aa   : > { %v1068_v30 = vsel %vm942_vm7, %v1063_v29, 0  ;;  %v1891_v29 = vld [vmem:[%s680_s26] ss:$0 sm:$0xff] }
 0x3ab   : > { %1077 = vmatpush.bf16.msrb.mxu1 %v1068_v30 }
 0x3af   : > { %1254 = vmatpush.bf16.msra.mxu1 %v1738_v16 }
 0x3b3   : > { %1255 = vmatpush.bf16.msra.mxu1 %v1737_v17 }
 0x3f0   : > { %v933_v31 = vpop.xlane.xlu1 %932 }
 0x3f1   : > { %1906 = vrcp.f32 %v933_v31 }
 0x3f7   : > { %v1907_v32 = vpop.eup %1906 }
 0x3f8   : > { %v935_v33 = vmul.f32 %v1907_v32, %v1899_v7 }
 0x3fa   : > { %v936_v35 = vpack.c.bf16 %v935_v33, %v935_v33  ;;  %v1892_v33 = vld [vmem:[%s803_s24] ss:$0 sm:$0xff] }
 0x3fc   : > { %1680 = vmatmul.msk.bf16.vlgmr.msra.gmra.mxu2 %vm904_vm6, %v936_v35 }
 0x3fd   : > { %1141 = vmatpush.bf16.msra.mxu2 %v1132_v36 }
 0x3fe   : > { %v994_v37 = vpop.xlane.xlu1 %993 }
 0x3ff   : > { %1908 = vrcp.f32 %v994_v37 }
 0x405   : > { %v1909_v38 = vpop.eup %1908 }
 0x406   : > { %v996_v39 = vmul.f32 %v1909_v38, %v1901_v14 }
 0x408   : > { %v997_v40 = vpack.c.bf16 %v996_v39, %v996_v39 }
 0x40c   : > { %1682 = vmatmul.msk.bf16.vlgmr.msrb.gmra.mxu2 %vm904_vm6, %v997_v40  ;;  %v1742_v40 = vld [vmem:[%s2561_s3 + $0x18] sm:$0xff] }
 0x40d   : > { %1350 = vmatpush.bf16.msra.mxu3 %v1742_v40 }
 0x40e   : > { %v1122_v41 = vpop.xlane.xlu1 %1121 }
 0x40f   : > { %1910 = vrcp.f32 %v1122_v41 }
 0x415   : > { %v1911_v42 = vpop.eup %1910 }
 0x416   : > { %v1124_v43 = vmul.f32 %v1911_v42, %v1903_v23  ;;  %v1058_v44 = vpop.xlane.xlu1 %1057 }
 0x417   : > { %1912 = vrcp.f32 %v1058_v44 }
 0x418   : > { %v1125_v45 = vpack.c.bf16 %v1124_v43, %v1124_v43 }
 0x41c   : > { %1686 = vmatmul.msk.bf16.vlgmr.msra.gmra.mxu2 %vm904_vm6, %v1125_v45  ;;  %v1741_v45 = vld [vmem:[%s2561_s3 + $0x10] sm:$0xff] }
 0x41d   : > { %v1913_v46 = vpop.eup %1912  ;;  %1351 = vmatpush.bf16.msra.mxu3 %v1741_v45 }
 0x41e   : > { %v1060_v47 = vmul.f32 %v1913_v46, %v1905_v25 }
 0x420   : > { %v1061_v48 = vpack.c.bf16 %v1060_v47, %v1060_v47 }
 0x422   : > { %1684 = vmatmul.msk.bf16.vlgmr.msrb.gmra.mxu1 %vm904_vm6, %v1061_v48 }
 0x47f   : > { %v955_v49 = vpop.f32.mrf.mxu2 }
 0x480   : > { %v959_v50 = vpack.c.bf16 %v955_v49, %v955_v49 }
 0x482   : > { %961 = vst.msk [vmem:[#allocation3] sm:$0xf] %vm960_vm8, %v959_v50  ;;  %v1740_v50 = vld [vmem:[%s2561_s3 + $0x8] sm:$0xff] }
 0x483   : > { %1352 = vmatpush.bf16.msra.mxu3 %v1740_v50 }
 0x487   : > { %v957_v51 = vpop.f32.mrf.mxu2 }
 0x48f   : > { %v1015_v52 = vpop.f32.mrf.mxu2 }
 0x490   : > { %v1019_v53 = vpack.c.bf16 %v1015_v52, %v1015_v52 }
 0x492   : > { %1021 = vrot.lane.b32.xlu1 %v1019_v53, %s2217_s7 }
 0x497   : > { %v1017_v54 = vpop.f32.mrf.mxu2 }
 0x498   : > { %v1739_v54 = vld [vmem:[%s2561_s3] sm:$0xff] }
 0x499   : > { %1353 = vmatpush.bf16.msra.mxu3 %v1739_v54 }
 0x49f   : > { %v1079_v55 = vpop.f32.mrf.mxu1  ;;  %v1143_v56 = vpop.f32.mrf.mxu2 }
 0x4a0   : > { %v1083_v57 = vpack.c.bf16 %v1079_v55, %v1079_v55  ;;  %v1147_v58 = vpack.c.bf16 %v1143_v56, %v1143_v56 }
 0x4a2   : > { %1149 = vrot.lane.b32.xlu0 %v1147_v58, %s2218_s9  ;;  %1085 = vrot.lane.b32.xlu2 %v1083_v57, %s2219_s4 }
 0x4a7   : > { %v1081_v59 = vpop.f32.mrf.mxu1  ;;  %v1145_v60 = vpop.f32.mrf.mxu2 }
 0x4fc   : > { %v1086_v0 = vpop.permute.xlu2 %1085 }
 0x504   : > { %v1022_v63 = vpop.permute.xlu1 %1021 }
 0x505   : > { %1025 = vst.msk [vmem:[#allocation3] sm:$0xf] %vm1024_vm9, %v1022_v63 }
 0x506   : > { %1089 = vst.msk [vmem:[#allocation3] sm:$0xf] %vm1088_vm10, %v1086_v0 }
 0x514   : > { %v1150_v1 = vpop.permute.xlu0 %1149 }
 0x515   : > { %1153 = vst.msk [vmem:[#allocation3] sm:$0xf] %vm1152_vm11, %v1150_v1 }
 0x51c   : > { %v1154_v2 = vld [vmem:[#allocation3] sm:$0xf] }
 0x51d   : > { %1695 = vmatmul.msk.bf16.vlgmr.msra.gmra.mxu0 %vm825_vm1, %v1154_v2 }
 0x59a   : > { %v1187_v5 = vpop.f32.mrf.mxu0 }
 0x59b   : > { %v1188_v6 = vadd.f32 %v1889_v4, %v1187_v5 }
 0x59d   : > { %v2622_v7 = vadd.f32 %v1188_v6, %v2567_v3 }
 0x59f   : > { %v1194_v8 = vsel %vm825_vm1, %v2622_v7, 0.0 }
 0x5a0   : > { %1195 = vadd.xlane.f32.xlu2 %v1194_v8 }
 0x5a2   : > { %v1189_v9 = vpop.f32.mrf.mxu0 }
 0x613   : > { %v1196_v10 = vpop.xlane.xlu2 %1195 }
 0x614   : > { %v1197_v12 = vmul.f32 %v1196_v10, %v2571_v11 }
 0x616   : > { %v1198_v13 = vsub.f32 %v2622_v7, %v1197_v12 }
 0x618   : > { %v1199_v14 = vmul.f32 %v1198_v13, %v1198_v13 }
 0x61a   : > { %v1200_v15 = vsel %vm825_vm1, %v1199_v14, 0.0 }
 0x61b   : > { %1201 = vadd.xlane.f32.xlu0 %v1200_v15 }
 0x68e   : > { %v1202_v3 = vpop.xlane.xlu0 %1201 }
 0x68f   : > { %v1203_v18 = vmul.f32 %v1202_v3, %v2571_v11 }
 0x691   : > { %v1204_v19 = vadd.f32 1e-06, %v1203_v18 }
 0x693   : > { %1914 = vrsqrt.f32 %v1204_v19  ;;  %vm1211_vm13 = vweird.f32 %v1204_v19 }
 0x699   : > { %v1915_v20 = vpop.eup %1914 }
 0x69a   : > { %v1206_v21 = vmul.f32 %v1915_v20, %v1204_v19  ;;  %vm1212_vm12 = vweird.f32 %v1915_v20  ;;  %v1893_v19 = vld [vmem:[%s811_s6] ss:$0 sm:$0xff] }
 0x69b   : > { %vm1213_vm14 = vmor %vm1211_vm13, %vm1212_vm12 }
 0x69c   : > { %v1207_v22 = vmul.f32 %v1915_v20, %v1206_v21 }
 0x69e   : > { %v1208_v23 = vmul.f32 0.5, %v1207_v22 }
 0x6a0   : > { %v1209_v24 = vsub.f32 1.5, %v1208_v23 }
 0x6a2   : > { %v1210_v25 = vmul.f32 %v1915_v20, %v1209_v24 }
 0x6a4   : > { %v1214_v27 = vsel %vm1213_vm14, %v1915_v20, %v1210_v25 }
 0x6a5   : > { %v1215_v28 = vmul.f32 %v1214_v27, %v1198_v13 }
 0x6a7   : > { %v1219_v30 = vmul.f32 %v1890_v26, %v1215_v28 }
 0x6a9   : > { %v1223_v31 = vadd.f32 %v1891_v29, %v1219_v30 }
 0x6ab   : > { %v1224_v32 = vpack.c.bf16 %v1223_v31, %v1223_v31 }
 0x6ad   : > { %1704 = vmatmul.msk.bf16.vlgmr.msra.gmra.mxu1 %vm825_vm1, %v1224_v32 }
 0x72a   : > { %v1257_v34 = vpop.f32.mrf.mxu1 }
 0x72b   : > { %v1258_v35 = vadd.f32 %v1892_v33, %v1257_v34 }
 0x72d   : > { %v1262_v36 = vmul.f32 0.70710677, %v1258_v35  ;;  %v1261_v16 = vmul.f32 0.5, %v1258_v35 }
 0x72f   : > { %v1263_v37 = vmul.f32 %v1262_v36, %v1262_v36 }
 0x731   : > { %v1264_v38 = vmin.f32 %v1263_v37, 16.0 }
 0x732   : > { %v1259_v39 = vpop.f32.mrf.mxu1 }
 0x733   : > { %v1265_v41 = vmul.f32 2.1237322e-06, %v1264_v38  ;;  %v1276_v42 = vmul.f32 3.8918573e-05, %v1264_v38 }
 0x735   : > { %v1266_v43 = vadd.f32 0.00028619796, %v1265_v41  ;;  %v1277_v44 = vadd.f32 0.001143296, %v1276_v42 }
 0x737   : > { %v1267_v46 = vmul.f32 %v1266_v43, %v1264_v38  ;;  %v1278_v47 = vmul.f32 %v1277_v44, %v1264_v38 }
 0x739   : > { %v1279_v48 = vadd.f32 0.014752088, %v1278_v47  ;;  %v1268_v49 = vadd.f32 0.0036580483, %v1267_v46 }
 0x73b   : > { %v1280_v51 = vmul.f32 %v1279_v48, %v1264_v38  ;;  %v1269_v53 = vmul.f32 %v1268_v49, %v1264_v38 }
 0x73d   : > { %v1281_v52 = vadd.f32 0.112945676, %v1280_v51  ;;  %v1270_v57 = vadd.f32 0.05243302, %v1269_v53 }
 0x73f   : > { %v1282_v55 = vmul.f32 %v1281_v52, %v1264_v38  ;;  %v1271_v60 = vmul.f32 %v1270_v57, %v1264_v38 }
 0x741   : > { %v1283_v56 = vadd.f32 0.4994258, %v1282_v55  ;;  %v1272_v61 = vadd.f32 0.18741608, %v1271_v60 }
 0x743   : > { %v1284_v58 = vmul.f32 %v1283_v56, %v1264_v38  ;;  %v1273_v63 = vmul.f32 %v1272_v61, %v1264_v38 }
 0x745   : > { %v1285_v59 = vadd.f32 1.0, %v1284_v58  ;;  %v1274_v4 = vadd.f32 1.1283791, %v1273_v63 }
 0x747   : > { %1916 = vrcp.f32 %v1285_v59  ;;  %v1297_v2 = vand.u32 2147483648, %v1285_v59  ;;  %v1295_v6 = vand.u32 2147483647, %v1285_v59  ;;  %vm1291_vm0 = vweird.f32 %v1285_v59 }
 0x748   : > { %v1275_v10 = vmul.f32 %v1274_v4, %v1262_v36 }
 0x749   : > { %v1298_v9 = vor.u32 1.1754944e-38, %v1297_v2  ;;  %vm1296_vm3 = vcmp.eq.f32.partialorder %v1295_v6, 8.507059e+37 }
 0x74d   : > { %v1917_v62 = vpop.eup %1916 }
 0x74e   : > { %v1287_v0 = vmul.f32 %v1917_v62, %v1285_v59  ;;  %vm1292_vm15 = vweird.f32 %v1917_v62 }
 0x74f   : > { %vm1293_vm2 = vmor %vm1291_vm0, %vm1292_vm15 }
 0x750   : > { %v1288_v1 = vsub.f32 1.0, %v1287_v0 }
 0x752   : > { %v1289_v5 = vmul.f32 %v1917_v62, %v1288_v1 }
 0x754   : > { %v1290_v8 = vadd.f32 %v1917_v62, %v1289_v5 }
 0x756   : > { %v1294_v12 = vsel %vm1293_vm2, %v1917_v62, %v1290_v8 }
 0x757   : > { %v1299_v13 = vsel %vm1296_vm3, %v1298_v9, %v1294_v12 }
 0x758   : > { %v1300_v14 = vmul.f32 %v1299_v13, %v1275_v10 }
 0x75a   : > { %v1705_v15 = vclamps-f32 %v1300_v14, 1.0 }
 0x75c   : > { %v1303_v17 = vadd.f32 1.0, %v1705_v15 }
 0x75e   : > { %v1304_v3 = vmul.f32 %v1303_v17, %v1261_v16 }
 0x760   : > { %v1305_v18 = vpack.c.bf16 %v1304_v3, %v1304_v3 }
 0x762   : > { %1722 = vmatmul.msk.bf16.vlgmr.msra.gmra.mxu3 %vm1342_vm4, %v1305_v18 }
 0x7e5   : > { %v1355_v20 = vpop.f32.mrf.mxu3 }
 0x7e6   : > { %v1356_v21 = vadd.f32 %v1893_v19, %v1355_v20 }
 0x7e8   : > { %v1359_v22 = vadd.f32 %v1356_v21, %v2622_v7 }
 0x7e9   : > { %1363 = sbr.rel (%p1723_p2) target bundleno = 2031 (0x7ef), region = 112 }
 0x7ed   : > { %v1357_v23 = vpop.f32.mrf.mxu3 }
 0x7ee   : > { %1364 = vst.msk [vmem:[#allocation2] sm:$0xff] %vm825_vm1, %v1359_v22 }
 0x7ef PF: > { %p1724_p4 = scmp.ne.s32.totalorder %s2186_s27, 1 }
 0x7f0   : > { %s2816_s13 = sld [smem:[#allocation44_spill]] (!%p1724_p4) }
 0x7f1   : > { %1368 = sbr.rel (%p1724_p4) target bundleno = 2307 (0x903), region = 116  ;;  %s2817_s16 = sld [smem:[#allocation45_spill]] (!%p1724_p4) }
 0x7f6   : > { %v1371_v24 = vsel %vm825_vm1, %v1359_v22, 0.0  ;;  %v1918_v38 = vld [vmem:[%s2816_s13] ss:$0 sm:$0xff] }
 0x7f7   : > { %1372 = vadd.xlane.f32.xlu0 %v1371_v24 }
 0x86a   : > { %v1373_v25 = vpop.xlane.xlu0 %1372 }
 0x86b   : > { %v1374_v26 = vmul.f32 %v1373_v25, %v2571_v11 }
 0x86d   : > { %v1375_v27 = vsub.f32 %v1359_v22, %v1374_v26 }
 0x86f   : > { %v1376_v28 = vmul.f32 %v1375_v27, %v1375_v27 }
 0x871   : > { %v1377_v7 = vsel %vm825_vm1, %v1376_v28, 0.0 }
 0x872   : > { %1378 = vadd.xlane.f32.xlu0 %v1377_v7 }
 0x8e5   : > { %v1379_v29 = vpop.xlane.xlu0 %1378 }
 0x8e6   : > { %v1380_v30 = vmul.f32 %v1379_v29, %v2571_v11  ;;  %v1919_v11 = vld [vmem:[%s2817_s16] ss:$0 sm:$0xff] }
 0x8e8   : > { %v1381_v31 = vadd.f32 1e-06, %v1380_v30 }
 0x8ea   : > { %1920 = vrsqrt.f32 %v1381_v31  ;;  %vm1388_vm6 = vweird.f32 %v1381_v31 }
 0x8f0   : > { %v1921_v32 = vpop.eup %1920 }
 0x8f1   : > { %v1383_v33 = vmul.f32 %v1921_v32, %v1381_v31  ;;  %vm1389_vm5 = vweird.f32 %v1921_v32 }
 0x8f2   : > { %vm1390_vm7 = vmor %vm1388_vm6, %vm1389_vm5 }
 0x8f3   : > { %v1384_v34 = vmul.f32 %v1921_v32, %v1383_v33 }
 0x8f5   : > { %v1385_v35 = vmul.f32 0.5, %v1384_v34 }
 0x8f7   : > { %v1386_v36 = vsub.f32 1.5, %v1385_v35 }
 0x8f9   : > { %v1387_v37 = vmul.f32 %v1921_v32, %v1386_v36 }
 0x8fb   : > { %v1391_v39 = vsel %vm1390_vm7, %v1921_v32, %v1387_v37 }
 0x8fc   : > { %v1392_v40 = vmul.f32 %v1391_v39, %v1375_v27 }
 0x8fe   : > { %v1396_v41 = vmul.f32 %v1918_v38, %v1392_v40 }
 0x900   : > { %v1400_v42 = vadd.f32 %v1919_v11, %v1396_v41 }
 0x902   : > { %1401 = vst.msk [vmem:[%s776_s29] sm:$0xff] %vm825_vm1, %v1400_v42 }
 0x903 PF: > { %s2818_s8 = sld [smem:[#allocation21_spill]]  ;;  %s1415_s4 = sshll.u32 %s776_s29, 4  ;;  %s1416_s4 = int_to_ptr.vmem [resolvable:$true] %s1415_s4 }
 0x904   : > { %s2820_s7 = sld [smem:[#allocation46_spill]]  ;;  %s2821_s14 = sand.u32 1, %s2178_s25  }
 0x905   : > { %s1403_s17 = scalar_lea.sflag [#allocation6], %s2821_s14 }
 0x909   : > { %s1726_s19 = sshll.u32 %s2818_s8, 3 }
 0x90a   : > { %s1413_s9 = scalar_lea.hbm %s2820_s7, %s1726_s19  ;;  %s2092_s22 = scalar_lea.hbm %s2820_s7, 16 }
 0x90b   : > { %s1417_s0 = sshll.u32 %s1413_s9, 4  ;;  %s1418_s0 = int_to_ptr.hbm [resolvable:$true] %s1417_s0 }
 0x90c   : > { %s2086_s20 = sshra.s32 %s1418_s0, 4  ;;  %s2087_s20 = int_to_ptr.hbm [resolvable:$true] %s2086_s20 }
 0x90d   : > { %s2088_s30 = scalar_lea.hbm %s2087_s20, 8  ;;  %p2093_p8 = scmp.lt.s32.totalorder %s2087_s20, %s2820_s7 }
 0x90e   : > { %p2089_p5 = scmp.ne.s32.totalorder %s2087_s20, %s2088_s30  ;;  %p2094_p10 = scmp.lt.s32.totalorder %s2092_s22, %s2088_s30 }
 0x910   : > { %p2090_p6 = pnand %p2089_p5, %p2468_p9  ;;  %p2095_p3 = por %p2094_p10, %p2093_p8 }
 0x912   : > { %p2091_p7 = pneg %p2090_p6 }
 0x914   : > { %p2096_p12 = pnand %p2095_p3, %p2091_p7 }
 0x916   : > { %2099 = shalt.err (!%p2096_p12)
}
 0x917   : > { %1755 = dma.vmem_to_hbm [thread:$0]  (%p2468_p9), %s1416_s4, 128, %s1418_s0, %s1403_s17  }
 0x918 PF: > { %s2822_s18 = sld [smem:[#allocation24_spill]] }
 0x919   : > { %s2823_s29 = sld [smem:[#allocation19_spill]] }
 0x91e   : > { %p1781_p1 = scmp.ge.s32.totalorder %s2822_s18, 2 }
 0x91f   : > { %s1429_s23 = sand.u32 1, %s2823_s29  }
 0x920   : > { %p1775_p13 = pnand %p1781_p1, %p2401_p11  ;;  %s1430_s24 = scalar_lea.sflag [#allocation6], %s1429_s23 }
 0x922   : > { %p1776_p0 = pneg %p1775_p13 }
 0x924   : > { %2157 = dma.done.wait (%p1776_p0), %s1430_s24, 128  }
 0x925   : > { %2159 = vsyncadd (%p1776_p0), %s1430_s24, 4294967168  ;;  %s33_s0 = sadd.s32 1, %s2822_s18   ;;  %s2825_s21 = sld [smem:[#allocation17_spill]] }
 0x926   : > { %p30_p2 = scmp.ge.s32.totalorder %s33_s0, 6   ;;  %s2826_s22 = sld [smem:[#allocation18_spill]] }
 0x927   : > { %s2827_s23 = sld [smem:[#allocation27_spill]]  ;;  %s2834_s24 = smov %s2178_s25 }
 0x928   : > { %s2828_s27 = sld [smem:[#allocation20_spill]] }
 0x929   : > { %s2829_s26 = sld [smem:[#allocation28_spill]] }
 0x92a   : > { %s2830_s6 = sld [smem:[#allocation22_spill]] }
 0x92b   : > { %s2831_s28 = sld [smem:[#allocation23_spill]] }
 0x92c   : > { %s2832_s29 = sld [smem:[#allocation25_spill]]  ;;  %32 = sbr.rel (!%p30_p2) target bundleno = 27 (0x1b), region = 205 }
 0x92d   : > { %s2833_s30 = sld [smem:[#allocation26_spill]] }
 0x92e   : > { %s2835_s25 = smov %s2828_s27 }
 0x930   : > { %s2836_s27 = smov %s2830_s6 }
 0x931   :  { %1436 = vsyncpa [#allocation5], 1 }
 0x932   :  { %1438 = vsyncpa [#allocation5 + $0x1], 1 }
 0x933   :  { %1439 = vsyncpa [#allocation8], 1 }
 0x934   :  { %1440 = vsyncpa [#allocation6], 1 }
 0x935   :  { %1442 = vsyncpa [#allocation6 + $0x1], 1 }

</bundles_post_ra>
